<compile_context>
chip_gen: v7x
topology: tpu7x:2x2x1
jax: 0.10.0
libtpu: 0.0.40
codegen_flags: <defaults>
</compile_context>

<pallas_src>
import functools

import jax
import jax.numpy as jnp
from jax.experimental import pallas as pl
from jax.experimental.pallas import tpu as pltpu

NEG_SLOPE = 0.01                      # torch.nn.LeakyReLU() default
_FUSED_MAX_N = 2048                   # fused-all-depths path gate (padded N)
_VMEM_LIMIT = 32 * 1024 * 1024        # safe on v5e/v6e/v7x


def _leaky(z):
    return jnp.where(z > 0, z, NEG_SLOPE * z)


def _mlp3(x, w1, b1, w2, b2, w3, b3):
    """Fused 3x (GraphLayer -> LeakyReLU) on a row tile (pure values)."""
    h = _leaky(jnp.dot(x, w1, preferred_element_type=jnp.float32) + b1)
    h = _leaky(jnp.dot(h, w2, preferred_element_type=jnp.float32) + b2)
    return _leaky(jnp.dot(h, w3, preferred_element_type=jnp.float32) + b3)


def _round_up(n, m):
    return ((n + m - 1) // m) * m


def _pick_divisor(n, cap):
    """Largest value <= cap that divides n (n is a multiple of 128)."""
    c = min(cap, n)
    while n % c:
        c //= 2
    return c


# ----------------------------------------------------------------------------
# Kernel A: whole forward fused (small / medium graphs).
#   grid = (max_depth, n_k_blocks); x resident in the output VMEM block.
# ----------------------------------------------------------------------------
def _fused_kernel(inp_ref, adj_ref, m_ref,
                  hw1, hb1, hw2, hb2, hw3, hb3,
                  fw1, fb1, fw2, fb2, fw3, fb3,
                  x_out, acc_ref, *, tile_k):
    d = pl.program_id(0)
    k = pl.program_id(1)
    nk = pl.num_programs(1)

    # Depth-0 entry: x = LeakyMLP3_h(node_inputs), written once.
    @pl.when((d == 0) & (k == 0))
    def _():
        x_out[...] = _mlp3(inp_ref[...],
                           hw1[...], hb1[...], hw2[...], hb2[...],
                           hw3[...], hb3[...])

    @pl.when(k == 0)
    def _():
        acc_ref[...] = jnp.zeros_like(acc_ref)

    # First f-stack of this depth, for this K block of rows only (each row's
    # y is computed exactly once per depth; no dead work on the last depth).
    start = pl.multiple_of(k * tile_k, tile_k)
    y_blk = _mlp3(x_out[pl.ds(start, tile_k), :],
                  fw1[...], fb1[...], fw2[...], fb2[...], fw3[...], fb3[...])

    # Exact spmm: int8 {0,1} adjacency is upcast per (n_pad, tile_k) block
    # only (no full-slab f32 copy), accumulated in f32.
    acc_ref[...] += jnp.dot(adj_ref[...].astype(jnp.float32), y_blk,
                            preferred_element_type=jnp.float32)

    @pl.when(k == nk - 1)
    def _():
        z = _mlp3(acc_ref[...],
                  fw1[...], fb1[...], fw2[...], fb2[...], fw3[...], fb3[...])
        x_out[...] = x_out[...] + z * m_ref[...]


def _fused_call(inp, adj_i8, msk, h_params, f_params, n_pad, tile_k, max_depth):
    din = inp.shape[1]
    h0 = h_params[0][0].shape[1]
    h1 = h_params[1][0].shape[1]
    dout = h_params[2][0].shape[1]
    params_flat = [t for layer in (*h_params, *f_params) for t in layer]
    nk = n_pad // tile_k

    def mlp_flops(i):
        return 2 * n_pad * (i * h0 + h0 * h1 + h1 * dout)

    flops = mlp_flops(din) + max_depth * (2 * n_pad * n_pad * dout
                                          + 2 * mlp_flops(dout))
    bytes_accessed = (max_depth * n_pad * n_pad          # int8 adjacency
                      + 4 * n_pad * (din + dout)         # inputs + final x
                      + 4 * max_depth * n_pad            # masks
                      + 4 * sum(int(p.size) for p in params_flat))

    in_specs = ([pl.BlockSpec((n_pad, din), lambda d, k: (0, 0)),
                 pl.BlockSpec((None, n_pad, tile_k), lambda d, k: (d, 0, k)),
                 pl.BlockSpec((None, n_pad, 1), lambda d, k: (d, 0, 0))]
                + [pl.BlockSpec(p.shape, lambda d, k: (0, 0))
                   for p in params_flat])

    kernel = functools.partial(_fused_kernel, tile_k=tile_k)
    return pl.pallas_call(
        kernel,
        grid=(max_depth, nk),
        in_specs=in_specs,
        out_specs=pl.BlockSpec((n_pad, dout), lambda d, k: (0, 0)),
        out_shape=jax.ShapeDtypeStruct((n_pad, dout), jnp.float32),
        scratch_shapes=[pltpu.VMEM((n_pad, dout), jnp.float32)],
        compiler_params=pltpu.CompilerParams(
            dimension_semantics=("arbitrary", "arbitrary"),
            vmem_limit_bytes=_VMEM_LIMIT),
        cost_estimate=pl.CostEstimate(flops=int(flops), transcendentals=0,
                                      bytes_accessed=int(bytes_accessed)),
    )(inp, adj_i8, msk, *params_flat)


# ----------------------------------------------------------------------------
# Kernel B1: row-tiled 3-layer MLP (h-stack init, and per-depth first f-stack
# on the large-graph path).
# ----------------------------------------------------------------------------
def _mlp_kernel(x_ref, w1, b1, w2, b2, w3, b3, o_ref):
    o_ref[...] = _mlp3(x_ref[...],
                       w1[...], b1[...], w2[...], b2[...], w3[...], b3[...])


def _mlp_call(x, layers, tile_n, n_pad):
    din = x.shape[1]
    (w1, b1), (w2, b2), (w3, b3) = layers
    h0, h1, dout = w1.shape[1], w2.shape[1], w3.shape[1]
    params_flat = [w1, b1, w2, b2, w3, b3]

    flops = 2 * n_pad * (din * h0 + h0 * h1 + h1 * dout)
    bytes_accessed = 4 * (n_pad * (din + dout)
                          + sum(int(p.size) for p in params_flat))

    return pl.pallas_call(
        _mlp_kernel,
        grid=(n_pad // tile_n,),
        in_specs=([pl.BlockSpec((tile_n, din), lambda i: (i, 0))]
                  + [pl.BlockSpec(p.shape, lambda i: (0, 0))
                     for p in params_flat]),
        out_specs=pl.BlockSpec((tile_n, dout), lambda i: (i, 0)),
        out_shape=jax.ShapeDtypeStruct((n_pad, dout), jnp.float32),
        compiler_params=pltpu.CompilerParams(
            dimension_semantics=("parallel",),
            vmem_limit_bytes=_VMEM_LIMIT),
        cost_estimate=pl.CostEstimate(flops=int(flops), transcendentals=0,
                                      bytes_accessed=int(bytes_accessed)),
    )(x, *params_flat)


# ----------------------------------------------------------------------------
# Kernel B2: per-depth spmm + second f-stack + masked residual, row + K tiled.
#   s = adj[d] @ y   (K-accumulated into an f32 scratch)
#   x_new = x + mlp3_f(s) * mask[d]
# ----------------------------------------------------------------------------
def _spmm_depth_kernel(adj_ref, y_ref, x_ref, m_ref,
                       fw1, fb1, fw2, fb2, fw3, fb3,
                       x_out, acc_ref):
    k = pl.program_id(1)

    @pl.when(k == 0)
    def _():
        acc_ref[...] = jnp.zeros_like(acc_ref)

    # int8 adjacency upcast per (tile_n, tile_k) block only; f32 accumulation.
    acc_ref[...] += jnp.dot(adj_ref[...].astype(jnp.float32), y_ref[...],
                            preferred_element_type=jnp.float32)

    @pl.when(k == pl.num_programs(1) - 1)
    def _():
        z = _mlp3(acc_ref[...],
                  fw1[...], fb1[...], fw2[...], fb2[...], fw3[...], fb3[...])
        x_out[...] = x_ref[...] + z * m_ref[...]


def _spmm_depth_call(adj_d, y, x, mask_d, f_params, tile_n, tile_k, n_pad):
    dout = x.shape[1]
    h0 = f_params[0][0].shape[1]
    h1 = f_params[1][0].shape[1]
    params_flat = [t for layer in f_params for t in layer]

    flops = (2 * n_pad * n_pad * dout
             + 2 * n_pad * (dout * h0 + h0 * h1 + h1 * dout))
    bytes_accessed = (n_pad * n_pad                     # int8 adjacency
                      + 4 * n_pad * (3 * dout + 1)      # y, x in, x out, mask
                      + 4 * sum(int(p.size) for p in params_flat))

    in_specs = ([pl.BlockSpec((tile_n, tile_k), lambda i, k: (i, k)),
                 pl.BlockSpec((tile_k, dout), lambda i, k: (k, 0)),
                 pl.BlockSpec((tile_n, dout), lambda i, k: (i, 0)),
                 pl.BlockSpec((tile_n, 1), lambda i, k: (i, 0))]
                + [pl.BlockSpec(p.shape, lambda i, k: (0, 0))
                   for p in params_flat])

    return pl.pallas_call(
        _spmm_depth_kernel,
        grid=(n_pad // tile_n, n_pad // tile_k),
        in_specs=in_specs,
        out_specs=pl.BlockSpec((tile_n, dout), lambda i, k: (i, 0)),
        out_shape=jax.ShapeDtypeStruct((n_pad, dout), jnp.float32),
        scratch_shapes=[pltpu.VMEM((tile_n, dout), jnp.float32)],
        compiler_params=pltpu.CompilerParams(
            dimension_semantics=("parallel", "arbitrary"),
            vmem_limit_bytes=_VMEM_LIMIT),
        cost_estimate=pl.CostEstimate(flops=int(flops), transcendentals=0,
                                      bytes_accessed=int(bytes_accessed)),
    )(adj_d, y, x, mask_d, *params_flat)


# ----------------------------------------------------------------------------
# Forward wrapper
# ----------------------------------------------------------------------------
def graph_cnn_forward(adj_mats, masks, node_inputs, params, max_depth,
                      *, force_tiled=False):
    n = node_inputs.shape[0]
    n_pad = _round_up(max(n, 128), 128)   # 128-aligned: int8/bf16/f32 safe
    pad_r = n_pad - n

    inp = jnp.pad(node_inputs.astype(jnp.float32), ((0, pad_r), (0, 0)))
    msk = jnp.pad(masks.astype(jnp.float32), ((0, 0), (0, pad_r), (0, 0)))
    # Adjacency entries are strictly {0,1}: int8 storage is exact and halves
    # HBM bytes of the bandwidth-bound spmm vs bf16.  Zero-padded rows/cols
    # keep the aggregation exact for real rows.
    adj = jnp.pad(adj_mats, ((0, 0), (0, pad_r), (0, pad_r))).astype(jnp.int8)

    # Row tile for the large-graph path (512 cap per review; must divide n_pad).
    tile_n = _pick_divisor(n_pad, 512)

    if max_depth == 0:
        return _mlp_call(inp, params["h"], tile_n, n_pad)[:n]

    if (not force_tiled) and n_pad <= _FUSED_MAX_N:
        # Single fused call: x / accumulator stay in VMEM across all depths.
        tile_k = _pick_divisor(n_pad, 512)
        x = _fused_call(inp, adj, msk, params["h"], params["f"],
                        n_pad, tile_k, max_depth)
    else:
        # Large graphs: row + K tiled, one small y-call + one spmm-call per
        # depth (first f-stack computed at the top of each depth -> no dead
        # work on the final depth).
        tile_k = _pick_divisor(n_pad, 2048)
        x = _mlp_call(inp, params["h"], tile_n, n_pad)
        for d in range(max_depth):
            y = _mlp_call(x, params["f"], tile_n, n_pad)
            x = _spmm_depth_call(adj[d], y, x, msk[d], params["f"],
                                 tile_n, tile_k, n_pad)
    return x[:n]


# ----------------------------------------------------------------------------
# Parameter construction (mirrors GraphLayer(in, out): W[in,out], b[out])
# ----------------------------------------------------------------------------
def make_graph_layer(key, in_dim, out_dim):
    kw, kb = jax.random.split(key)
    stdv = 1.0 / jnp.sqrt(jnp.float32(out_dim))
    w = jax.random.uniform(kw, (in_dim, out_dim), jnp.float32, -stdv, stdv)
    b = jax.random.uniform(kb, (1, out_dim), jnp.float32, -stdv, stdv)
    return w, b


def init_graph_cnn_params(key, input_dim, hid_dims, output_dim):
    keys = jax.random.split(key, 9)
    h = (make_graph_layer(keys[0], input_dim, hid_dims[0]),
         make_graph_layer(keys[1], hid_dims[0], hid_dims[1]),
         make_graph_layer(keys[2], hid_dims[1], output_dim))
    f = (make_graph_layer(keys[3], output_dim, hid_dims[0]),
         make_graph_layer(keys[4], hid_dims[0], hid_dims[1]),
         make_graph_layer(keys[5], hid_dims[1], output_dim))
    # g_gc* layers exist in the PyTorch __init__ but are unused in forward.
    g = (make_graph_layer(keys[6], output_dim, hid_dims[0]),
         make_graph_layer(keys[7], hid_dims[0], hid_dims[1]),
         make_graph_layer(keys[8], hid_dims[1], output_dim))
    return {"h": h, "f": f, "g": g}


# ----------------------------------------------------------------------------
# Pure-JAX reference for sanity checking (matches the PyTorch forward).
# ----------------------------------------------------------------------------
def _ref_mlp3(x, params):
    for (w, b) in params:
        x = _leaky(x @ w + b)
    return x


def _ref_forward(adj_mats, masks, node_inputs, params, max_depth):
    x = _ref_mlp3(node_inputs, params["h"])
    for d in range(max_depth):
        y = _ref_mlp3(x, params["f"])
        y = adj_mats[d] @ y
        y = _ref_mlp3(y, params["f"])
        x = x + y * masks[d]
    return x


if __name__ == "__main__":
    N = 64            # number of graph nodes
    INPUT_DIM = 16
    HID_DIMS = [32, 16]
    OUTPUT_DIM = 16
    MAX_DEPTH = 2

    key = jax.random.PRNGKey(0)
    k_param, k_x, k_adj, k_mask = jax.random.split(key, 4)

    params = init_graph_cnn_params(k_param, INPUT_DIM, HID_DIMS, OUTPUT_DIM)

    node_inputs = jax.random.normal(k_x, (N, INPUT_DIM), jnp.float32)
    # sparse-ish 0/1 adjacency, materialized dense: [max_depth, N, N]
    adj_dense = (jax.random.uniform(k_adj, (MAX_DEPTH, N, N)) < 0.1
                 ).astype(jnp.float32)
    masks = (jax.random.uniform(k_mask, (MAX_DEPTH, N, 1)) < 0.5
             ).astype(jnp.float32)

    ref = _ref_forward(adj_dense, masks, node_inputs, params, MAX_DEPTH)

    # Fused single-call path (default for small / medium graphs).
    out_fused = graph_cnn_forward(adj_dense, masks, node_inputs, params,
                                  MAX_DEPTH)
    out_fused = jax.block_until_ready(out_fused)
    assert out_fused.shape == (N, OUTPUT_DIM)
    assert jnp.allclose(out_fused, ref, atol=1e-4, rtol=1e-4)

    # Row + K tiled path (used for very large graphs) exercised for coverage.
    out_tiled = graph_cnn_forward(adj_dense, masks, node_inputs, params,
                                  MAX_DEPTH, force_tiled=True)
    out_tiled = jax.block_until_ready(out_tiled)
    assert jnp.allclose(out_tiled, ref, atol=1e-4, rtol=1e-4)

    print("KERNEL_OK")
</pallas_src>

<mosaic_0001>
module attributes {stable_mosaic.version = 11 : i64} {
  func.func @_fused_kernel(%arg0: i32, %arg1: i32, %arg2: memref<128x16xf32, #tpu.memory_space<vmem>>, %arg3: memref<1x128x128xi8, #tpu.memory_space<vmem>>, %arg4: memref<1x128x1xf32, #tpu.memory_space<vmem>>, %arg5: memref<16x32xf32, #tpu.memory_space<vmem>>, %arg6: memref<1x32xf32, #tpu.memory_space<vmem>>, %arg7: memref<32x16xf32, #tpu.memory_space<vmem>>, %arg8: memref<1x16xf32, #tpu.memory_space<vmem>>, %arg9: memref<16x16xf32, #tpu.memory_space<vmem>>, %arg10: memref<1x16xf32, #tpu.memory_space<vmem>>, %arg11: memref<16x32xf32, #tpu.memory_space<vmem>>, %arg12: memref<1x32xf32, #tpu.memory_space<vmem>>, %arg13: memref<32x16xf32, #tpu.memory_space<vmem>>, %arg14: memref<1x16xf32, #tpu.memory_space<vmem>>, %arg15: memref<16x16xf32, #tpu.memory_space<vmem>>, %arg16: memref<1x16xf32, #tpu.memory_space<vmem>>, %arg17: memref<128x16xf32, #tpu.memory_space<vmem>>, %arg18: memref<128x16xf32, #tpu.memory_space<vmem>>) attributes {dimension_semantics = [#tpu.dimension_semantics<arbitrary>, #tpu.dimension_semantics<arbitrary>], iteration_bounds = array<i64: 2, 1>, scalar_prefetch = 0 : i64, scratch_operands = 1 : i64, tpu.core_type = #tpu.core_type<tc>, window_params = [{pipeline_mode = #tpu.pipeline_mode<synchronous>, transform_indices = @transform_0, window_bounds = array<i64: 128, 16>}, {transform_indices = @transform_1, window_bounds = array<i64: 1, 128, 128>}, {transform_indices = @transform_2, window_bounds = array<i64: 1, 128, 1>}, {pipeline_mode = #tpu.pipeline_mode<synchronous>, transform_indices = @transform_3, window_bounds = array<i64: 16, 32>}, {pipeline_mode = #tpu.pipeline_mode<synchronous>, transform_indices = @transform_4, window_bounds = array<i64: 1, 32>}, {pipeline_mode = #tpu.pipeline_mode<synchronous>, transform_indices = @transform_5, window_bounds = array<i64: 32, 16>}, {pipeline_mode = #tpu.pipeline_mode<synchronous>, transform_indices = @transform_6, window_bounds = array<i64: 1, 16>}, {pipeline_mode = #tpu.pipeline_mode<synchronous>, transform_indices = @transform_7, window_bounds = array<i64: 16, 16>}, {pipeline_mode = #tpu.pipeline_mode<synchronous>, transform_indices = @transform_8, window_bounds = array<i64: 1, 16>}, {pipeline_mode = #tpu.pipeline_mode<synchronous>, transform_indices = @transform_9, window_bounds = array<i64: 16, 32>}, {pipeline_mode = #tpu.pipeline_mode<synchronous>, transform_indices = @transform_10, window_bounds = array<i64: 1, 32>}, {pipeline_mode = #tpu.pipeline_mode<synchronous>, transform_indices = @transform_11, window_bounds = array<i64: 32, 16>}, {pipeline_mode = #tpu.pipeline_mode<synchronous>, transform_indices = @transform_12, window_bounds = array<i64: 1, 16>}, {pipeline_mode = #tpu.pipeline_mode<synchronous>, transform_indices = @transform_13, window_bounds = array<i64: 16, 16>}, {pipeline_mode = #tpu.pipeline_mode<synchronous>, transform_indices = @transform_14, window_bounds = array<i64: 1, 16>}, {pipeline_mode = #tpu.pipeline_mode<synchronous>, transform_indices = @transform_15, window_bounds = array<i64: 128, 16>}]} {
    %c0_i32 = arith.constant 0 : i32
    %0 = arith.cmpi eq, %arg0, %c0_i32 : i32
    %c0_i32_0 = arith.constant 0 : i32
    %1 = arith.cmpi eq, %arg1, %c0_i32_0 : i32
    %2 = arith.andi %0, %1 : i1
    %3 = arith.extui %2 : i1 to i32
    %c0_i32_1 = arith.constant 0 : i32
    %4 = arith.cmpi ne, %3, %c0_i32_1 : i32
    scf.if %4 {
      %c0_34 = arith.constant 0 : index
      %c0_35 = arith.constant 0 : index
      %52 = vector.load %arg2[%c0_34, %c0_35] : memref<128x16xf32, #tpu.memory_space<vmem>>, vector<128x16xf32>
      %c0_36 = arith.constant 0 : index
      %c0_37 = arith.constant 0 : index
      %53 = vector.load %arg5[%c0_36, %c0_37] : memref<16x32xf32, #tpu.memory_space<vmem>>, vector<16x32xf32>
      %c0_38 = arith.constant 0 : index
      %c0_39 = arith.constant 0 : index
      %54 = vector.load %arg6[%c0_38, %c0_39] : memref<1x32xf32, #tpu.memory_space<vmem>>, vector<1x32xf32>
      %c0_40 = arith.constant 0 : index
      %c0_41 = arith.constant 0 : index
      %55 = vector.load %arg7[%c0_40, %c0_41] : memref<32x16xf32, #tpu.memory_space<vmem>>, vector<32x16xf32>
      %c0_42 = arith.constant 0 : index
      %c0_43 = arith.constant 0 : index
      %56 = vector.load %arg8[%c0_42, %c0_43] : memref<1x16xf32, #tpu.memory_space<vmem>>, vector<1x16xf32>
      %c0_44 = arith.constant 0 : index
      %c0_45 = arith.constant 0 : index
      %57 = vector.load %arg9[%c0_44, %c0_45] : memref<16x16xf32, #tpu.memory_space<vmem>>, vector<16x16xf32>
      %c0_46 = arith.constant 0 : index
      %c0_47 = arith.constant 0 : index
      %58 = vector.load %arg10[%c0_46, %c0_47] : memref<1x16xf32, #tpu.memory_space<vmem>>, vector<1x16xf32>
      %cst_48 = arith.constant dense<0.000000e+00> : vector<128x32xf32>
      %59 = tpu.matmul %52, %53, %cst_48 {dimension_numbers = #tpu.dot_dimension_numbers<[1], [0], [0], [1], [0, 0, 1, 1], [], []>} : vector<128x16xf32>, vector<16x32xf32>, vector<128x32xf32> -> vector<128x32xf32>
      %60 = vector.broadcast %54 : vector<1x32xf32> to vector<128x32xf32>
      %61 = arith.addf %59, %60 : vector<128x32xf32>
      %cst_49 = arith.constant 0.000000e+00 : f32
      %62 = vector.broadcast %cst_49 : f32 to vector<128x32xf32>
      %63 = arith.cmpf ogt, %61, %62 : vector<128x32xf32>
      %cst_50 = arith.constant 0.00999999977 : f32
      %64 = vector.broadcast %cst_50 : f32 to vector<128x32xf32>
      %65 = arith.mulf %64, %61 : vector<128x32xf32>
      %66 = arith.select %63, %61, %65 : vector<128x32xi1>, vector<128x32xf32>
      %cst_51 = arith.constant dense<0.000000e+00> : vector<128x16xf32>
      %67 = tpu.matmul %66, %55, %cst_51 {dimension_numbers = #tpu.dot_dimension_numbers<[1], [0], [0], [1], [0, 0, 1, 1], [], []>} : vector<128x32xf32>, vector<32x16xf32>, vector<128x16xf32> -> vector<128x16xf32>
      %68 = vector.broadcast %56 : vector<1x16xf32> to vector<128x16xf32>
      %69 = arith.addf %67, %68 : vector<128x16xf32>
      %cst_52 = arith.constant 0.000000e+00 : f32
      %70 = vector.broadcast %cst_52 : f32 to vector<128x16xf32>
      %71 = arith.cmpf ogt, %69, %70 : vector<128x16xf32>
      %cst_53 = arith.constant 0.00999999977 : f32
      %72 = vector.broadcast %cst_53 : f32 to vector<128x16xf32>
      %73 = arith.mulf %72, %69 : vector<128x16xf32>
      %74 = arith.select %71, %69, %73 : vector<128x16xi1>, vector<128x16xf32>
      %cst_54 = arith.constant dense<0.000000e+00> : vector<128x16xf32>
      %75 = tpu.matmul %74, %57, %cst_54 {dimension_numbers = #tpu.dot_dimension_numbers<[1], [0], [0], [1], [0, 0, 1, 1], [], []>} : vector<128x16xf32>, vector<16x16xf32>, vector<128x16xf32> -> vector<128x16xf32>
      %76 = vector.broadcast %58 : vector<1x16xf32> to vector<128x16xf32>
      %77 = arith.addf %75, %76 : vector<128x16xf32>
      %cst_55 = arith.constant 0.000000e+00 : f32
      %78 = vector.broadcast %cst_55 : f32 to vector<128x16xf32>
      %79 = arith.cmpf ogt, %77, %78 : vector<128x16xf32>
      %cst_56 = arith.constant 0.00999999977 : f32
      %80 = vector.broadcast %cst_56 : f32 to vector<128x16xf32>
      %81 = arith.mulf %80, %77 : vector<128x16xf32>
      %82 = arith.select %79, %77, %81 : vector<128x16xi1>, vector<128x16xf32>
      %c0_57 = arith.constant 0 : index
      %c0_58 = arith.constant 0 : index
      %83 = vector.load %arg17[%c0_57, %c0_58] : memref<128x16xf32, #tpu.memory_space<vmem>>, vector<128x16xf32>
      tpu.vector_store %arg17[%c0_57, %c0_58], %82 {strides = array<i32>} : memref<128x16xf32, #tpu.memory_space<vmem>>, vector<128x16xf32>,
    } else {
    }
    %c0_i32_2 = arith.constant 0 : i32
    %5 = arith.cmpi eq, %arg1, %c0_i32_2 : i32
    %6 = arith.extui %5 : i1 to i32
    %c0_i32_3 = arith.constant 0 : i32
    %7 = arith.cmpi ne, %6, %c0_i32_3 : i32
    scf.if %7 {
      %cst_34 = arith.constant 0.000000e+00 : f32
      %52 = vector.broadcast %cst_34 : f32 to vector<128x16xf32>
      %c0_35 = arith.constant 0 : index
      %c0_36 = arith.constant 0 : index
      %53 = vector.load %arg18[%c0_35, %c0_36] : memref<128x16xf32, #tpu.memory_space<vmem>>, vector<128x16xf32>
      tpu.vector_store %arg18[%c0_35, %c0_36], %52 {strides = array<i32>} : memref<128x16xf32, #tpu.memory_space<vmem>>, vector<128x16xf32>,
    } else {
    }
    %c128_i32 = arith.constant 128 : i32
    %8 = arith.muli %arg1, %c128_i32 : i32
    %9 = tpu.assume_multiple %8, 128 : i32
    %10 = arith.index_cast %9 : i32 to index
    %c0 = arith.constant 0 : index
    %11 = vector.load %arg17[%10, %c0] : memref<128x16xf32, #tpu.memory_space<vmem>>, vector<128x16xf32>
    %c0_4 = arith.constant 0 : index
    %c0_5 = arith.constant 0 : index
    %12 = vector.load %arg11[%c0_4, %c0_5] : memref<16x32xf32, #tpu.memory_space<vmem>>, vector<16x32xf32>
    %c0_6 = arith.constant 0 : index
    %c0_7 = arith.constant 0 : index
    %13 = vector.load %arg12[%c0_6, %c0_7] : memref<1x32xf32, #tpu.memory_space<vmem>>, vector<1x32xf32>
    %c0_8 = arith.constant 0 : index
    %c0_9 = arith.constant 0 : index
    %14 = vector.load %arg13[%c0_8, %c0_9] : memref<32x16xf32, #tpu.memory_space<vmem>>, vector<32x16xf32>
    %c0_10 = arith.constant 0 : index
    %c0_11 = arith.constant 0 : index
    %15 = vector.load %arg14[%c0_10, %c0_11] : memref<1x16xf32, #tpu.memory_space<vmem>>, vector<1x16xf32>
    %c0_12 = arith.constant 0 : index
    %c0_13 = arith.constant 0 : index
    %16 = vector.load %arg15[%c0_12, %c0_13] : memref<16x16xf32, #tpu.memory_space<vmem>>, vector<16x16xf32>
    %c0_14 = arith.constant 0 : index
    %c0_15 = arith.constant 0 : index
    %17 = vector.load %arg16[%c0_14, %c0_15] : memref<1x16xf32, #tpu.memory_space<vmem>>, vector<1x16xf32>
    %cst = arith.constant dense<0.000000e+00> : vector<128x32xf32>
    %18 = tpu.matmul %11, %12, %cst {dimension_numbers = #tpu.dot_dimension_numbers<[1], [0], [0], [1], [0, 0, 1, 1], [], []>} : vector<128x16xf32>, vector<16x32xf32>, vector<128x32xf32> -> vector<128x32xf32>
    %19 = vector.broadcast %13 : vector<1x32xf32> to vector<128x32xf32>
    %20 = arith.addf %18, %19 : vector<128x32xf32>
    %cst_16 = arith.constant 0.000000e+00 : f32
    %21 = vector.broadcast %cst_16 : f32 to vector<128x32xf32>
    %22 = arith.cmpf ogt, %20, %21 : vector<128x32xf32>
    %cst_17 = arith.constant 0.00999999977 : f32
    %23 = vector.broadcast %cst_17 : f32 to vector<128x32xf32>
    %24 = arith.mulf %23, %20 : vector<128x32xf32>
    %25 = arith.select %22, %20, %24 : vector<128x32xi1>, vector<128x32xf32>
    %cst_18 = arith.constant dense<0.000000e+00> : vector<128x16xf32>
    %26 = tpu.matmul %25, %14, %cst_18 {dimension_numbers = #tpu.dot_dimension_numbers<[1], [0], [0], [1], [0, 0, 1, 1], [], []>} : vector<128x32xf32>, vector<32x16xf32>, vector<128x16xf32> -> vector<128x16xf32>
    %27 = vector.broadcast %15 : vector<1x16xf32> to vector<128x16xf32>
    %28 = arith.addf %26, %27 : vector<128x16xf32>
    %cst_19 = arith.constant 0.000000e+00 : f32
    %29 = vector.broadcast %cst_19 : f32 to vector<128x16xf32>
    %30 = arith.cmpf ogt, %28, %29 : vector<128x16xf32>
    %cst_20 = arith.constant 0.00999999977 : f32
    %31 = vector.broadcast %cst_20 : f32 to vector<128x16xf32>
    %32 = arith.mulf %31, %28 : vector<128x16xf32>
    %33 = arith.select %30, %28, %32 : vector<128x16xi1>, vector<128x16xf32>
    %cst_21 = arith.constant dense<0.000000e+00> : vector<128x16xf32>
    %34 = tpu.matmul %33, %16, %cst_21 {dimension_numbers = #tpu.dot_dimension_numbers<[1], [0], [0], [1], [0, 0, 1, 1], [], []>} : vector<128x16xf32>, vector<16x16xf32>, vector<128x16xf32> -> vector<128x16xf32>
    %35 = vector.broadcast %17 : vector<1x16xf32> to vector<128x16xf32>
    %36 = arith.addf %34, %35 : vector<128x16xf32>
    %cst_22 = arith.constant 0.000000e+00 : f32
    %37 = vector.broadcast %cst_22 : f32 to vector<128x16xf32>
    %38 = arith.cmpf ogt, %36, %37 : vector<128x16xf32>
    %cst_23 = arith.constant 0.00999999977 : f32
    %39 = vector.broadcast %cst_23 : f32 to vector<128x16xf32>
    %40 = arith.mulf %39, %36 : vector<128x16xf32>
    %41 = arith.select %38, %36, %40 : vector<128x16xi1>, vector<128x16xf32>
    %c0_24 = arith.constant 0 : index
    %c0_25 = arith.constant 0 : index
    %42 = vector.load %arg18[%c0_24, %c0_25] : memref<128x16xf32, #tpu.memory_space<vmem>>, vector<128x16xf32>
    %c0_26 = arith.constant 0 : index
    %c0_27 = arith.constant 0 : index
    %c0_28 = arith.constant 0 : index
    %43 = vector.load %arg3[%c0_26, %c0_27, %c0_28] : memref<1x128x128xi8, #tpu.memory_space<vmem>>, vector<1x128x128xi8>
    %44 = vector.shape_cast %43 : vector<1x128x128xi8> to vector<128x128xi8>
    %45 = arith.sitofp %44 : vector<128x128xi8> to vector<128x128xf32>
    %cst_29 = arith.constant dense<0.000000e+00> : vector<128x16xf32>
    %46 = tpu.matmul %45, %41, %cst_29 {dimension_numbers = #tpu.dot_dimension_numbers<[1], [0], [0], [1], [0, 0, 1, 1], [], []>} : vector<128x128xf32>, vector<128x16xf32>, vector<128x16xf32> -> vector<128x16xf32>
    %47 = arith.addf %42, %46 : vector<128x16xf32>
    %c0_30 = arith.constant 0 : index
    %c0_31 = arith.constant 0 : index
    %48 = vector.load %arg18[%c0_30, %c0_31] : memref<128x16xf32, #tpu.memory_space<vmem>>, vector<128x16xf32>
    tpu.vector_store %arg18[%c0_30, %c0_31], %47 {strides = array<i32>} : memref<128x16xf32, #tpu.memory_space<vmem>>, vector<128x16xf32>,
    %c0_i32_32 = arith.constant 0 : i32
    %49 = arith.cmpi eq, %arg1, %c0_i32_32 : i32
    %50 = arith.extui %49 : i1 to i32
    %c0_i32_33 = arith.constant 0 : i32
    %51 = arith.cmpi ne, %50, %c0_i32_33 : i32
    scf.if %51 {
      %c0_34 = arith.constant 0 : index
      %c0_35 = arith.constant 0 : index
      %52 = vector.load %arg18[%c0_34, %c0_35] : memref<128x16xf32, #tpu.memory_space<vmem>>, vector<128x16xf32>
      %c0_36 = arith.constant 0 : index
      %c0_37 = arith.constant 0 : index
      %53 = vector.load %arg11[%c0_36, %c0_37] : memref<16x32xf32, #tpu.memory_space<vmem>>, vector<16x32xf32>
      %c0_38 = arith.constant 0 : index
      %c0_39 = arith.constant 0 : index
      %54 = vector.load %arg12[%c0_38, %c0_39] : memref<1x32xf32, #tpu.memory_space<vmem>>, vector<1x32xf32>
      %c0_40 = arith.constant 0 : index
      %c0_41 = arith.constant 0 : index
      %55 = vector.load %arg13[%c0_40, %c0_41] : memref<32x16xf32, #tpu.memory_space<vmem>>, vector<32x16xf32>
      %c0_42 = arith.constant 0 : index
      %c0_43 = arith.constant 0 : index
      %56 = vector.load %arg14[%c0_42, %c0_43] : memref<1x16xf32, #tpu.memory_space<vmem>>, vector<1x16xf32>
      %c0_44 = arith.constant 0 : index
      %c0_45 = arith.constant 0 : index
      %57 = vector.load %arg15[%c0_44, %c0_45] : memref<16x16xf32, #tpu.memory_space<vmem>>, vector<16x16xf32>
      %c0_46 = arith.constant 0 : index
      %c0_47 = arith.constant 0 : index
      %58 = vector.load %arg16[%c0_46, %c0_47] : memref<1x16xf32, #tpu.memory_space<vmem>>, vector<1x16xf32>
      %cst_48 = arith.constant dense<0.000000e+00> : vector<128x32xf32>
      %59 = tpu.matmul %52, %53, %cst_48 {dimension_numbers = #tpu.dot_dimension_numbers<[1], [0], [0], [1], [0, 0, 1, 1], [], []>} : vector<128x16xf32>, vector<16x32xf32>, vector<128x32xf32> -> vector<128x32xf32>
      %60 = vector.broadcast %54 : vector<1x32xf32> to vector<128x32xf32>
      %61 = arith.addf %59, %60 : vector<128x32xf32>
      %cst_49 = arith.constant 0.000000e+00 : f32
      %62 = vector.broadcast %cst_49 : f32 to vector<128x32xf32>
      %63 = arith.cmpf ogt, %61, %62 : vector<128x32xf32>
      %cst_50 = arith.constant 0.00999999977 : f32
      %64 = vector.broadcast %cst_50 : f32 to vector<128x32xf32>
      %65 = arith.mulf %64, %61 : vector<128x32xf32>
      %66 = arith.select %63, %61, %65 : vector<128x32xi1>, vector<128x32xf32>
      %cst_51 = arith.constant dense<0.000000e+00> : vector<128x16xf32>
      %67 = tpu.matmul %66, %55, %cst_51 {dimension_numbers = #tpu.dot_dimension_numbers<[1], [0], [0], [1], [0, 0, 1, 1], [], []>} : vector<128x32xf32>, vector<32x16xf32>, vector<128x16xf32> -> vector<128x16xf32>
      %68 = vector.broadcast %56 : vector<1x16xf32> to vector<128x16xf32>
      %69 = arith.addf %67, %68 : vector<128x16xf32>
      %cst_52 = arith.constant 0.000000e+00 : f32
      %70 = vector.broadcast %cst_52 : f32 to vector<128x16xf32>
      %71 = arith.cmpf ogt, %69, %70 : vector<128x16xf32>
      %cst_53 = arith.constant 0.00999999977 : f32
      %72 = vector.broadcast %cst_53 : f32 to vector<128x16xf32>
      %73 = arith.mulf %72, %69 : vector<128x16xf32>
      %74 = arith.select %71, %69, %73 : vector<128x16xi1>, vector<128x16xf32>
      %cst_54 = arith.constant dense<0.000000e+00> : vector<128x16xf32>
      %75 = tpu.matmul %74, %57, %cst_54 {dimension_numbers = #tpu.dot_dimension_numbers<[1], [0], [0], [1], [0, 0, 1, 1], [], []>} : vector<128x16xf32>, vector<16x16xf32>, vector<128x16xf32> -> vector<128x16xf32>
      %76 = vector.broadcast %58 : vector<1x16xf32> to vector<128x16xf32>
      %77 = arith.addf %75, %76 : vector<128x16xf32>
      %cst_55 = arith.constant 0.000000e+00 : f32
      %78 = vector.broadcast %cst_55 : f32 to vector<128x16xf32>
      %79 = arith.cmpf ogt, %77, %78 : vector<128x16xf32>
      %cst_56 = arith.constant 0.00999999977 : f32
      %80 = vector.broadcast %cst_56 : f32 to vector<128x16xf32>
      %81 = arith.mulf %80, %77 : vector<128x16xf32>
      %82 = arith.select %79, %77, %81 : vector<128x16xi1>, vector<128x16xf32>
      %c0_57 = arith.constant 0 : index
      %c0_58 = arith.constant 0 : index
      %83 = vector.load %arg17[%c0_57, %c0_58] : memref<128x16xf32, #tpu.memory_space<vmem>>, vector<128x16xf32>
      %c0_59 = arith.constant 0 : index
      %c0_60 = arith.constant 0 : index
      %c0_61 = arith.constant 0 : index
      %84 = vector.load %arg4[%c0_59, %c0_60, %c0_61] : memref<1x128x1xf32, #tpu.memory_space<vmem>>, vector<1x128x1xf32>
      %85 = vector.shape_cast %84 : vector<1x128x1xf32> to vector<128x1xf32>
      %86 = vector.broadcast %85 : vector<128x1xf32> to vector<128x16xf32>
      %87 = arith.mulf %82, %86 : vector<128x16xf32>
      %88 = arith.addf %83, %87 : vector<128x16xf32>
      %c0_62 = arith.constant 0 : index
      %c0_63 = arith.constant 0 : index
      %89 = vector.load %arg17[%c0_62, %c0_63] : memref<128x16xf32, #tpu.memory_space<vmem>>, vector<128x16xf32>
      tpu.vector_store %arg17[%c0_62, %c0_63], %88 {strides = array<i32>} : memref<128x16xf32, #tpu.memory_space<vmem>>, vector<128x16xf32>,
    } else {
    }
    return
  }
  func.func @transform_0(%arg0: i32, %arg1: i32) -> (i32, i32) {
    %c0_i32 = arith.constant 0 : i32
    %c0_i32_0 = arith.constant 0 : i32
    %c0_i32_1 = arith.constant 0 : i32
    return %c0_i32, %c0_i32_0 : i32, i32
  }
  func.func @transform_1(%arg0: i32, %arg1: i32) -> (i32, i32, i32) {
    %c0_i32 = arith.constant 0 : i32
    %c0_i32_0 = arith.constant 0 : i32
    return %arg0, %c0_i32, %arg1 : i32, i32, i32
  }
  func.func @transform_2(%arg0: i32, %arg1: i32) -> (i32, i32, i32) {
    %c0_i32 = arith.constant 0 : i32
    %c0_i32_0 = arith.constant 0 : i32
    %c0_i32_1 = arith.constant 0 : i32
    return %arg0, %c0_i32, %c0_i32_0 : i32, i32, i32
  }
  func.func @transform_3(%arg0: i32, %arg1: i32) -> (i32, i32) {
    %c0_i32 = arith.constant 0 : i32
    %c0_i32_0 = arith.constant 0 : i32
    %c0_i32_1 = arith.constant 0 : i32
    return %c0_i32, %c0_i32_0 : i32, i32
  }
  func.func @transform_4(%arg0: i32, %arg1: i32) -> (i32, i32) {
    %c0_i32 = arith.constant 0 : i32
    %c0_i32_0 = arith.constant 0 : i32
    %c0_i32_1 = arith.constant 0 : i32
    return %c0_i32, %c0_i32_0 : i32, i32
  }
  func.func @transform_5(%arg0: i32, %arg1: i32) -> (i32, i32) {
    %c0_i32 = arith.constant 0 : i32
    %c0_i32_0 = arith.constant 0 : i32
    %c0_i32_1 = arith.constant 0 : i32
    return %c0_i32, %c0_i32_0 : i32, i32
  }
  func.func @transform_6(%arg0: i32, %arg1: i32) -> (i32, i32) {
    %c0_i32 = arith.constant 0 : i32
    %c0_i32_0 = arith.constant 0 : i32
    %c0_i32_1 = arith.constant 0 : i32
    return %c0_i32, %c0_i32_0 : i32, i32
  }
  func.func @transform_7(%arg0: i32, %arg1: i32) -> (i32, i32) {
    %c0_i32 = arith.constant 0 : i32
    %c0_i32_0 = arith.constant 0 : i32
    %c0_i32_1 = arith.constant 0 : i32
    return %c0_i32, %c0_i32_0 : i32, i32
  }
  func.func @transform_8(%arg0: i32, %arg1: i32) -> (i32, i32) {
    %c0_i32 = arith.constant 0 : i32
    %c0_i32_0 = arith.constant 0 : i32
    %c0_i32_1 = arith.constant 0 : i32
    return %c0_i32, %c0_i32_0 : i32, i32
  }
  func.func @transform_9(%arg0: i32, %arg1: i32) -> (i32, i32) {
    %c0_i32 = arith.constant 0 : i32
    %c0_i32_0 = arith.constant 0 : i32
    %c0_i32_1 = arith.constant 0 : i32
    return %c0_i32, %c0_i32_0 : i32, i32
  }
  func.func @transform_10(%arg0: i32, %arg1: i32) -> (i32, i32) {
    %c0_i32 = arith.constant 0 : i32
    %c0_i32_0 = arith.constant 0 : i32
    %c0_i32_1 = arith.constant 0 : i32
    return %c0_i32, %c0_i32_0 : i32, i32
  }
  func.func @transform_11(%arg0: i32, %arg1: i32) -> (i32, i32) {
    %c0_i32 = arith.constant 0 : i32
    %c0_i32_0 = arith.constant 0 : i32
    %c0_i32_1 = arith.constant 0 : i32
    return %c0_i32, %c0_i32_0 : i32, i32
  }
  func.func @transform_12(%arg0: i32, %arg1: i32) -> (i32, i32) {
    %c0_i32 = arith.constant 0 : i32
    %c0_i32_0 = arith.constant 0 : i32
    %c0_i32_1 = arith.constant 0 : i32
    return %c0_i32, %c0_i32_0 : i32, i32
  }
  func.func @transform_13(%arg0: i32, %arg1: i32) -> (i32, i32) {
    %c0_i32 = arith.constant 0 : i32
    %c0_i32_0 = arith.constant 0 : i32
    %c0_i32_1 = arith.constant 0 : i32
    return %c0_i32, %c0_i32_0 : i32, i32
  }
  func.func @transform_14(%arg0: i32, %arg1: i32) -> (i32, i32) {
    %c0_i32 = arith.constant 0 : i32
    %c0_i32_0 = arith.constant 0 : i32
    %c0_i32_1 = arith.constant 0 : i32
    return %c0_i32, %c0_i32_0 : i32, i32
  }
  func.func @transform_15(%arg0: i32, %arg1: i32) -> (i32, i32) {
    %c0_i32 = arith.constant 0 : i32
    %c0_i32_0 = arith.constant 0 : i32
    %c0_i32_1 = arith.constant 0 : i32
    return %c0_i32, %c0_i32_0 : i32, i32
  }
}

</mosaic_0001>

<bundles_post_ra>
// kernel: tpu_custom_call.1
= control target key start
LH: loop header
LB: loop body
LE: loop exit
PB: predicated region body
PF: predicated region fallthrough
CT: control target
= control target key end

     0   :  { %s4230_s18 = smov 0   ;;  %s4232_s19 = smov 0   ;;  %s4996_s0 = inlined_call_operand.vmem [shape: f32[128,16], index: 0, kind: input, shape index: {}]   ;;  %s4997_s1 = inlined_call_operand.vmem [shape: s8[2,128,128], index: 1, kind: input, shape index: {}]   ;;  %s4998_s2 = inlined_call_operand.vmem [shape: f32[2,128,1], index: 2, kind: input, shape index: {}]   ;;  %s4999_s3 = inlined_call_operand.vmem [shape: f32[16,32], index: 3, kind: input, shape index: {}]   ;;  %s5000_s4 = inlined_call_operand.vmem [shape: f32[1,32], index: 4, kind: input, shape index: {}]   ;;  %s5001_s5 = inlined_call_operand.vmem [shape: f32[32,16], index: 5, kind: input, shape index: {}]   ;;  %s5002_s6 = inlined_call_operand.vmem [shape: f32[1,16], index: 6, kind: input, shape index: {}]   ;;  %s5003_s7 = inlined_call_operand.vmem [shape: f32[16,16], index: 7, kind: input, shape index: {}]   ;;  %s5004_s8 = inlined_call_operand.vmem [shape: f32[1,16], index: 8, kind: input, shape index: {}]   ;;  %s5005_s9 = inlined_call_operand.vmem [shape: f32[16,32], index: 9, kind: input, shape index: {}]   ;;  %s5006_s10 = inlined_call_operand.vmem [shape: f32[1,32], index: 10, kind: input, shape index: {}]   ;;  %s5007_s11 = inlined_call_operand.vmem [shape: f32[32,16], index: 11, kind: input, shape index: {}]   ;;  %s5008_s12 = inlined_call_operand.vmem [shape: f32[1,16], index: 12, kind: input, shape index: {}]   ;;  %s5009_s13 = inlined_call_operand.vmem [shape: f32[16,16], index: 13, kind: input, shape index: {}]   ;;  %s5010_s14 = inlined_call_operand.vmem [shape: f32[1,16], index: 14, kind: input, shape index: {}]   ;;  %s5011_s15 = inlined_call_operand.vmem [shape: f32[128,16], index: 15, kind: output, shape index: {}]  }
   0x1   :  { %s4234_s20 = smov 0  }
   0x2 LB: > { %5013 = sst [smem:[#allocation3_spill]] %s4142_s19  ;;  %s37_s21 = sadd.s32 1, %s4142_s19  ;;  %s4146_s20 = sphi %s4234_s20, %s25_s20   ;;  %s4142_s19 = sphi %s4232_s19, %s5016_s19   ;;  %s4138_s18 = sphi %s4230_s18, %s5015_s18  }
   0x3   : > { %p3326_p0 = scmp.ge.s32.totalorder %s4146_s20, 1  ;;  %p39_p1 = scmp.ge.s32.totalorder %s37_s21, 2 }
   0x4   : > { %p459_p2 = scmp.lt.s32.totalorder %s4146_s20, 3 }
   0x5   : > { %s5018_s21 = smov (%p39_p1, %s37_s21), 0 }
   0x6   : > { %5014 = sst [smem:[#allocation4_spill]] %s5018_s21  ;;  %p460_p3 = pnand %p3326_p0, %p459_p2 }
   0x7   : > { %p510_p4 = scmp.lt.s32.totalorder (!%p460_p3), %s4138_s18, 1  ;;  %p523_p5 = scmp.eq.s32.totalorder (!%p460_p3), %s4138_s18, 0 }
   0x8   : > { %463 = sbr.rel (%p460_p3) target bundleno = 2318 (0x90e), region = 80 }
   0xf   : > { %s5020_s18 = smov (!%p510_p4, %s4138_s18), 1  ;;  %528 = sbr.rel (!%p523_p5) target bundleno = 708 (0x2c4), region = 84 }
  0x10   : > { %s3487_s22 = sshll.u32 %s5020_s18, 5  ;;  %s3488_s23 = sshll.u32 %s5020_s18, 7  ;;  %v545_v0 = vld [vmem:[%s4999_s3] sm:$0xff] (%p523_p5)  ;;  %v546_v1 = vld [vmem:[%s4999_s3 + $0x8] sm:$0xff] (%p523_p5)  ;;  %vm562_vm0 = vcmask (%p523_p5), 130048   ;;  %v531_v7 = vld [vmem:[%s4996_s0 + $0x10] sm:$0xff] (%p523_p5) }
  0x11   : > { %s4251_s26 = scalar_lea.vmem %s4997_s1, %s3487_s22  ;;  %s4256_s29 = scalar_lea.vmem %s4998_s2, %s3488_s23  ;;  %v529_v2 = vld [vmem:[%s4996_s0] sm:$0xff] (%p523_p5)  ;;  %v4010_v3 = vpack.c.bf16 (%p523_p5), %v546_v1, %v545_v0  ;;  %v530_v5 = vld [vmem:[%s4996_s0 + $0x8] sm:$0xff] (%p523_p5)  ;;  %v539_v8 = vld [vmem:[%s4996_s0 + $0x50] sm:$0xff] (%p523_p5)  ;;  %vm810_vm1 = vcmask (%p523_p5), 261120  }
  0x12   : > { %3694 = vmatprep.mubr.msk.f32.mxu0 (%p523_p5), %vm562_vm0, %v529_v2  ;;  %v537_v4 = vld [vmem:[%s4996_s0 + $0x40] sm:$0xff] (%p523_p5)  ;;  %v538_v6 = vld [vmem:[%s4996_s0 + $0x48] sm:$0xff] (%p523_p5)  ;;  %v550_v11 = vld [vmem:[%s5001_s5 + $0x10] sm:$0xff] (%p523_p5) }
  0x13   : > { %4011 = vmatprep.subr.bf16.mxu0 (%p523_p5), %v4010_v3  ;;  %4090 = vmatprep.subr.bf16.mxu1 (%p523_p5), %v4010_v3  ;;  %v548_v9 = vld [vmem:[%s5001_s5] sm:$0xff] (%p523_p5)  ;;  %v549_v10 = vld [vmem:[%s5001_s5 + $0x8] sm:$0xff] (%p523_p5)  ;;  %v551_v13 = vld [vmem:[%s5001_s5 + $0x18] sm:$0xff] (%p523_p5) }
  0x14   : > { %4013 = vmatpush3.bf16.msra.mxu0 (%p523_p5), %v4010_v3  ;;  %4091 = vmatpush3.bf16.msra.mxu1 (%p523_p5), %v4010_v3  ;;  %v4014_v12 = vpack.c.bf16 (%p523_p5), %v549_v10, %v548_v9  ;;  %v532_v14 = vld [vmem:[%s4996_s0 + $0x18] sm:$0xff] (%p523_p5)  ;;  %v533_v16 = vld [vmem:[%s4996_s0 + $0x20] sm:$0xff] (%p523_p5)  ;;  %v4018_v18 = vpack.c.bf16 (%p523_p5), %v551_v13, %v550_v11  ;;  %v534_v19 = vld [vmem:[%s4996_s0 + $0x28] sm:$0xff] (%p523_p5) }
  0x15   : > { %3706 = vmatprep.mubr.msk.f32.mxu1 (%p523_p5), %vm562_vm0, %v537_v4  ;;  %v540_v15 = vld [vmem:[%s4996_s0 + $0x58] sm:$0xff] (%p523_p5)  ;;  %v541_v17 = vld [vmem:[%s4996_s0 + $0x60] sm:$0xff] (%p523_p5)  ;;  %v542_v20 = vld [vmem:[%s4996_s0 + $0x68] sm:$0xff] (%p523_p5) }
  0x16   : > { %4015 = vmatprep.subr.bf16.mxu1 %v4014_v12  ;;  %v535_v21 = vld [vmem:[%s4996_s0 + $0x30] sm:$0xff]  ;;  %v536_v23 = vld [vmem:[%s4996_s0 + $0x38] sm:$0xff]  ;;  %v553_v25 = vld [vmem:[%s5003_s7] sm:$0xff] }
  0x17   : > { %3695 = vmatmul.mubr.msk.f32.vlgmr.msra.gmra.mrb[0].mxu0 %vm562_vm0, %v530_v5  ;;  %3707 = vmatmul.mubr.msk.f32.vlgmr.msra.gmra.mrb[0].mxu1 %vm562_vm0, %v538_v6  ;;  %v543_v22 = vld [vmem:[%s4996_s0 + $0x70] sm:$0xff]  ;;  %v544_v24 = vld [vmem:[%s4996_s0 + $0x78] sm:$0xff]  ;;  %v554_v26 = vld [vmem:[%s5003_s7 + $0x8] sm:$0xff] }
  0x18   : > { %3697 = vmatprep.mubr.msk.f32.mxu0 %vm562_vm0, %v531_v7  ;;  %3709 = vmatprep.mubr.msk.f32.mxu1 %vm562_vm0, %v539_v8  ;;  %v4022_v27 = vpack.c.bf16 %v554_v26, %v553_v25  ;;  %v4349_v28 = vld [vmem:[%s5000_s4] ss:$0 sm:$0xff] }
  0x19   : > { %4017 = vmatpush3.bf16.msra.mxu1 %v4014_v12 }
  0x1a   : > { %4019 = vmatprep.subr.bf16.mxu1 %v4018_v18  ;;  %4023 = vmatprep.subr.bf16.mxu0 %v4022_v27 }
  0x1b   : > { %3698 = vmatmul.mubr.msk.f32.gmra.mrb[2].mxu0 %vm562_vm0, %v532_v14  ;;  %3710 = vmatmul.mubr.msk.f32.gmra.mrb[2].mxu1 %vm562_vm0, %v540_v15 }
  0x1c   : > { %3700 = vmatprep.mubr.msk.f32.mxu0 %vm562_vm0, %v533_v16  ;;  %3712 = vmatprep.mubr.msk.f32.mxu1 %vm562_vm0, %v541_v17 }
  0x1d   : > { %4021 = vmatpush3.bf16.msra.mxu1 %v4018_v18  ;;  %4025 = vmatpush3.bf16.msra.mxu0 %v4022_v27 }
  0x1f   : > { %3701 = vmatmul.mubr.msk.f32.gmra.mrb[4].mxu0 %vm562_vm0, %v534_v19  ;;  %3713 = vmatmul.mubr.msk.f32.gmra.mrb[4].mxu1 %vm562_vm0, %v542_v20 }
  0x20   : > { %3703 = vmatprep.mubr.msk.f32.mxu0 %vm562_vm0, %v535_v21  ;;  %3715 = vmatprep.mubr.msk.f32.mxu1 %vm562_vm0, %v543_v22 }
  0x23   : > { %3704 = vmatmul.mubr.msk.f32.gmra.mrb[6].mxu0 %vm562_vm0, %v536_v23  ;;  %3716 = vmatmul.mubr.msk.f32.gmra.mrb[6].mxu1 %vm562_vm0, %v544_v24 }
  0xea   : > { %v3696_v29 = vpop.f32.mrb[0].mxu0  ;;  %v3708_v30 = vpop.f32.mrb[0].mxu1 }
  0xeb   : > { %v683_v31 = vadd.f32 %v3696_v29, %v4349_v28  ;;  %v677_v32 = vpop.f32.mrb[1].mxu0  ;;  %v717_v33 = vpop.f32.mrb[1].mxu1  ;;  %v723_v4 = vadd.f32 %v3708_v30, %v4349_v28 }
  0xec   : > { %v678_v34 = vadd.f32 %v4349_v28, %v677_v32  ;;  %v718_v54 = vadd.f32 %v4349_v28, %v717_v33 }
  0xed   : > { %v773_v35 = vmul.f32 0.01, %v683_v31  ;;  %vm757_vm2 = vcmp.gt.f32.partialorder %v683_v31, 0.0  ;;  %v781_v11 = vmul.f32 0.01, %v723_v4  ;;  %vm765_vm12 = vcmp.gt.f32.partialorder %v723_v4, 0.0 }
  0xee   : > { %vm756_vm3 = vcmp.gt.f32.partialorder %v678_v34, 0.0  ;;  %v772_v36 = vmul.f32 0.01, %v678_v34  ;;  %v3699_v37 = vpop.f32.mrb[2].mxu0  ;;  %v3711_v38 = vpop.f32.mrb[2].mxu1  ;;  %vm764_vm8 = vcmp.gt.f32.partialorder %v718_v54, 0.0 }
  0xef   : > { %v693_v39 = vadd.f32 %v3699_v37, %v4349_v28  ;;  %v687_v40 = vpop.f32.mrb[3].mxu0  ;;  %v727_v41 = vpop.f32.mrb[3].mxu1  ;;  %v789_v44 = vsel %vm757_vm2, %v683_v31, %v773_v35  ;;  %v780_v0 = vmul.f32 0.01, %v718_v54  ;;  %v733_v12 = vadd.f32 %v3711_v38, %v4349_v28 }
  0xf0   : > { %v688_v42 = vadd.f32 %v4349_v28, %v687_v40  ;;  %v788_v43 = vsel %vm756_vm3, %v678_v34, %v772_v36  ;;  %v728_v2 = vadd.f32 %v4349_v28, %v727_v41  ;;  %v797_v19 = vsel %vm765_vm12, %v723_v4, %v781_v11 }
  0xf1   : > { %v775_v45 = vmul.f32 0.01, %v693_v39  ;;  %3726 = vmatprep.mubr.msk.f32.mxu1 %vm810_vm1, %v788_v43  ;;  %vm759_vm4 = vcmp.gt.f32.partialorder %v693_v39, 0.0  ;;  %v796_v9 = vsel %vm764_vm8, %v718_v54, %v780_v0  ;;  %v783_v17 = vmul.f32 0.01, %v733_v12 }
  0xf2   : > { %vm758_vm5 = vcmp.gt.f32.partialorder %v688_v42, 0.0  ;;  %v774_v46 = vmul.f32 0.01, %v688_v42  ;;  %v3702_v47 = vpop.f32.mrb[4].mxu0  ;;  %3727 = vmatmul.mubr.msk.f32.vlgmr.msra.gmra.mrb[8].mxu1 %vm810_vm1, %v789_v44  ;;  %v3714_v48 = vpop.f32.mrb[4].mxu1  ;;  %vm766_vm11 = vcmp.gt.f32.partialorder %v728_v2, 0.0 }
  0xf3   : > { %v703_v49 = vadd.f32 %v3702_v47, %v4349_v28  ;;  %v697_v50 = vpop.f32.mrb[5].mxu0  ;;  %v737_v51 = vpop.f32.mrb[5].mxu1  ;;  %v791_v56 = vsel %vm759_vm4, %v693_v39, %v775_v45  ;;  %v782_v7 = vmul.f32 0.01, %v728_v2  ;;  %v743_v18 = vadd.f32 %v3714_v48, %v4349_v28 }
  0xf4   : > { %v698_v52 = vadd.f32 %v4349_v28, %v697_v50  ;;  %v790_v53 = vsel %vm758_vm5, %v688_v42, %v774_v46  ;;  %v738_v10 = vadd.f32 %v4349_v28, %v737_v51  ;;  %vm767_vm14 = vcmp.gt.f32.partialorder %v733_v12, 0.0 }
  0xf5   : > { %v777_v55 = vmul.f32 0.01, %v703_v49  ;;  %3729 = vmatprep.mubr.msk.f32.mxu1 %vm810_vm1, %v790_v53  ;;  %vm761_vm6 = vcmp.gt.f32.partialorder %v703_v49, 0.0  ;;  %v798_v15 = vsel %vm766_vm11, %v728_v2, %v782_v7  ;;  %v785_v22 = vmul.f32 0.01, %v743_v18 }
  0xf6   : > { %vm760_vm7 = vcmp.gt.f32.partialorder %v698_v52, 0.0  ;;  %v776_v57 = vmul.f32 0.01, %v698_v52  ;;  %v3705_v58 = vpop.f32.mrb[6].mxu0  ;;  %3730 = vmatmul.mubr.msk.f32.gmra.mrb[10].mxu1 %vm810_vm1, %v791_v56  ;;  %v3717_v59 = vpop.f32.mrb[6].mxu1  ;;  %vm768_vm13 = vcmp.gt.f32.partialorder %v738_v10, 0.0  ;;  %v799_v24 = vsel %vm767_vm14, %v733_v12, %v783_v17 }
  0xf7   : > { %v713_v60 = vadd.f32 %v3705_v58, %v4349_v28  ;;  %v707_v61 = vpop.f32.mrb[7].mxu0  ;;  %v747_v62 = vpop.f32.mrb[7].mxu1  ;;  %v793_v5 = vsel %vm761_vm6, %v703_v49, %v777_v55  ;;  %v784_v14 = vmul.f32 0.01, %v738_v10  ;;  %v753_v23 = vadd.f32 %v3717_v59, %v4349_v28 }
  0xf8   : > { %v708_v63 = vadd.f32 %v4349_v28, %v707_v61  ;;  %v792_v1 = vsel %vm760_vm7, %v698_v52, %v776_v57  ;;  %v748_v16 = vadd.f32 %v4349_v28, %v747_v62  ;;  %vm769_vm2 = vcmp.gt.f32.partialorder %v743_v18, 0.0  ;;  %v4387_v28 = vld [vmem:[%s5002_s6] ss:$0 sm:$0xff] }
  0xf9   : > { %v779_v3 = vmul.f32 0.01, %v713_v60  ;;  %3732 = vmatprep.mubr.msk.f32.mxu1 %vm810_vm1, %v792_v1  ;;  %vm763_vm9 = vcmp.gt.f32.partialorder %v713_v60, 0.0  ;;  %v800_v21 = vsel %vm768_vm13, %v738_v10, %v784_v14  ;;  %v787_v26 = vmul.f32 0.01, %v753_v23 }
  0xfa   : > { %vm762_vm10 = vcmp.gt.f32.partialorder %v708_v63, 0.0  ;;  %v778_v6 = vmul.f32 0.01, %v708_v63  ;;  %3733 = vmatmul.mubr.msk.f32.gmra.mrb[12].mxu1 %vm810_vm1, %v793_v5  ;;  %v786_v20 = vmul.f32 0.01, %v748_v16  ;;  %vm770_vm15 = vcmp.gt.f32.partialorder %v748_v16, 0.0 }
  0xfb   : > { %v795_v13 = vsel %vm763_vm9, %v713_v60, %v779_v3  ;;  %v801_v27 = vsel %vm769_vm2, %v743_v18, %v785_v22  ;;  %vm771_vm3 = vcmp.gt.f32.partialorder %v753_v23, 0.0 }
  0xfc   : > { %v794_v8 = vsel %vm762_vm10, %v708_v63, %v778_v6  ;;  %v802_v25 = vsel %vm770_vm15, %v748_v16, %v786_v20  ;;  %v803_v29 = vsel %vm771_vm3, %v753_v23, %v787_v26 }
  0xfd   : > { %3735 = vmatprep.mubr.msk.f32.mxu1 %vm810_vm1, %v794_v8 }
  0xfe   : > { %3736 = vmatmul.mubr.msk.f32.gmra.mrb[14].mxu1 %vm810_vm1, %v795_v13 }
  0xff   : > { %3738 = vmatprep.mubr.msk.f32.mxu1 %vm810_vm1, %v796_v9 }
 0x102   : > { %3739 = vmatmul.mubr.msk.f32.gmra.mrb[16].mxu1 %vm810_vm1, %v797_v19 }
 0x103   : > { %3741 = vmatprep.mubr.msk.f32.mxu1 %vm810_vm1, %v798_v15 }
 0x106   : > { %3742 = vmatmul.mubr.msk.f32.gmra.mrb[18].mxu1 %vm810_vm1, %v799_v24 }
 0x107   : > { %3744 = vmatprep.mubr.msk.f32.mxu1 %vm810_vm1, %v800_v21 }
 0x10a   : > { %3745 = vmatmul.mubr.msk.f32.gmra.mrb[20].mxu1 %vm810_vm1, %v801_v27 }
 0x10b   : > { %3747 = vmatprep.mubr.msk.f32.mxu1 %vm810_vm1, %v802_v25 }
 0x10e   : > { %3748 = vmatmul.mubr.msk.f32.gmra.mrb[22].mxu1 %vm810_vm1, %v803_v29 }
 0x1c5   : > { %v3728_v30 = vpop.f32.mrb[8].mxu1 }
 0x1c6   : > { %v931_v31 = vadd.f32 %v3728_v30, %v4387_v28  ;;  %v925_v32 = vpop.f32.mrb[9].mxu1 }
 0x1c7   : > { %v926_v33 = vadd.f32 %v4387_v28, %v925_v32 }
 0x1c8   : > { %v1021_v34 = vmul.f32 0.01, %v931_v31  ;;  %vm1005_vm4 = vcmp.gt.f32.partialorder %v931_v31, 0.0 }
 0x1c9   : > { %vm1004_vm5 = vcmp.gt.f32.partialorder %v926_v33, 0.0  ;;  %v1020_v35 = vmul.f32 0.01, %v926_v33  ;;  %v3731_v36 = vpop.f32.mrb[10].mxu1 }
 0x1ca   : > { %v941_v37 = vadd.f32 %v3731_v36, %v4387_v28  ;;  %v935_v38 = vpop.f32.mrb[11].mxu1  ;;  %v1037_v41 = vsel %vm1005_vm4, %v931_v31, %v1021_v34 }
 0x1cb   : > { %v936_v39 = vadd.f32 %v4387_v28, %v935_v38  ;;  %v1036_v40 = vsel %vm1004_vm5, %v926_v33, %v1020_v35 }
 0x1cc   : > { %v1023_v42 = vmul.f32 0.01, %v941_v37  ;;  %3754 = vmatprep.mubr.msk.f32.mxu0 %vm562_vm0, %v1036_v40  ;;  %vm1007_vm1 = vcmp.gt.f32.partialorder %v941_v37, 0.0 }
 0x1cd   : > { %vm1006_vm6 = vcmp.gt.f32.partialorder %v936_v39, 0.0  ;;  %v1022_v43 = vmul.f32 0.01, %v936_v39  ;;  %v3734_v44 = vpop.f32.mrb[12].mxu1  ;;  %3755 = vmatmul.mubr.msk.f32.vlgmr.msra.gmra.mrb[8].mxu0 %vm562_vm0, %v1037_v41 }
 0x1ce   : > { %v951_v45 = vadd.f32 %v3734_v44, %v4387_v28  ;;  %v945_v46 = vpop.f32.mrb[13].mxu1  ;;  %v1039_v50 = vsel %vm1007_vm1, %v941_v37, %v1023_v42 }
 0x1cf   : > { %v946_v47 = vadd.f32 %v4387_v28, %v945_v46  ;;  %v1038_v48 = vsel %vm1006_vm6, %v936_v39, %v1022_v43 }
 0x1d0   : > { %v1025_v49 = vmul.f32 0.01, %v951_v45  ;;  %3757 = vmatprep.mubr.msk.f32.mxu0 %vm562_vm0, %v1038_v48  ;;  %vm1009_vm7 = vcmp.gt.f32.partialorder %v951_v45, 0.0 }
 0x1d1   : > { %vm1008_vm8 = vcmp.gt.f32.partialorder %v946_v47, 0.0  ;;  %v1024_v51 = vmul.f32 0.01, %v946_v47  ;;  %v3737_v52 = vpop.f32.mrb[14].mxu1  ;;  %3758 = vmatmul.mubr.msk.f32.gmra.mrb[10].mxu0 %vm562_vm0, %v1039_v50 }
 0x1d2   : > { %v961_v53 = vadd.f32 %v3737_v52, %v4387_v28  ;;  %v955_v54 = vpop.f32.mrb[15].mxu1  ;;  %v1041_v58 = vsel %vm1009_vm7, %v951_v45, %v1025_v49 }
 0x1d3   : > { %v956_v55 = vadd.f32 %v4387_v28, %v955_v54  ;;  %v1040_v56 = vsel %vm1008_vm8, %v946_v47, %v1024_v51 }
 0x1d4   : > { %v1027_v57 = vmul.f32 0.01, %v961_v53  ;;  %3760 = vmatprep.mubr.msk.f32.mxu0 %vm562_vm0, %v1040_v56  ;;  %vm1011_vm9 = vcmp.gt.f32.partialorder %v961_v53, 0.0 }
 0x1d5   : > { %vm1010_vm10 = vcmp.gt.f32.partialorder %v956_v55, 0.0  ;;  %v1026_v59 = vmul.f32 0.01, %v956_v55  ;;  %v3740_v60 = vpop.f32.mrb[16].mxu1  ;;  %3761 = vmatmul.mubr.msk.f32.gmra.mrb[12].mxu0 %vm562_vm0, %v1041_v58 }
 0x1d6   : > { %v971_v61 = vadd.f32 %v3740_v60, %v4387_v28  ;;  %v965_v62 = vpop.f32.mrb[17].mxu1  ;;  %v1043_v2 = vsel %vm1011_vm9, %v961_v53, %v1027_v57 }
 0x1d7   : > { %v966_v63 = vadd.f32 %v4387_v28, %v965_v62  ;;  %v1042_v0 = vsel %vm1010_vm10, %v956_v55, %v1026_v59 }
 0x1d8   : > { %v1029_v1 = vmul.f32 0.01, %v971_v61  ;;  %3763 = vmatprep.mubr.msk.f32.mxu0 %vm562_vm0, %v1042_v0  ;;  %vm1013_vm11 = vcmp.gt.f32.partialorder %v971_v61, 0.0 }
 0x1d9   : > { %vm1012_vm12 = vcmp.gt.f32.partialorder %v966_v63, 0.0  ;;  %v1028_v3 = vmul.f32 0.01, %v966_v63  ;;  %v3743_v4 = vpop.f32.mrb[18].mxu1  ;;  %3764 = vmatmul.mubr.msk.f32.gmra.mrb[14].mxu0 %vm562_vm0, %v1043_v2 }
 0x1da   : > { %v981_v5 = vadd.f32 %v3743_v4, %v4387_v28  ;;  %v975_v6 = vpop.f32.mrb[19].mxu1  ;;  %v1045_v10 = vsel %vm1013_vm11, %v971_v61, %v1029_v1 }
 0x1db   : > { %v976_v7 = vadd.f32 %v4387_v28, %v975_v6  ;;  %v1044_v8 = vsel %vm1012_vm12, %v966_v63, %v1028_v3 }
 0x1dc   : > { %v1031_v9 = vmul.f32 0.01, %v981_v5  ;;  %3766 = vmatprep.mubr.msk.f32.mxu0 %vm562_vm0, %v1044_v8  ;;  %vm1015_vm13 = vcmp.gt.f32.partialorder %v981_v5, 0.0 }
 0x1dd   : > { %vm1014_vm14 = vcmp.gt.f32.partialorder %v976_v7, 0.0  ;;  %v1030_v11 = vmul.f32 0.01, %v976_v7  ;;  %v3746_v12 = vpop.f32.mrb[20].mxu1  ;;  %3767 = vmatmul.mubr.msk.f32.gmra.mrb[16].mxu0 %vm562_vm0, %v1045_v10 }
 0x1de   : > { %v991_v13 = vadd.f32 %v3746_v12, %v4387_v28  ;;  %v985_v14 = vpop.f32.mrb[21].mxu1  ;;  %v1047_v18 = vsel %vm1015_vm13, %v981_v5, %v1031_v9 }
 0x1df   : > { %v986_v15 = vadd.f32 %v4387_v28, %v985_v14  ;;  %v1046_v16 = vsel %vm1014_vm14, %v976_v7, %v1030_v11 }
 0x1e0   : > { %v1033_v17 = vmul.f32 0.01, %v991_v13  ;;  %3769 = vmatprep.mubr.msk.f32.mxu0 %vm562_vm0, %v1046_v16  ;;  %vm1017_vm15 = vcmp.gt.f32.partialorder %v991_v13, 0.0 }
 0x1e1   : > { %vm1016_vm2 = vcmp.gt.f32.partialorder %v986_v15, 0.0  ;;  %v1032_v19 = vmul.f32 0.01, %v986_v15  ;;  %v3749_v20 = vpop.f32.mrb[22].mxu1  ;;  %3770 = vmatmul.mubr.msk.f32.gmra.mrb[18].mxu0 %vm562_vm0, %v1047_v18 }
 0x1e2   : > { %v1001_v21 = vadd.f32 %v3749_v20, %v4387_v28  ;;  %v995_v22 = vpop.f32.mrb[23].mxu1  ;;  %v1049_v26 = vsel %vm1017_vm15, %v991_v13, %v1033_v17 }
 0x1e3   : > { %v996_v23 = vadd.f32 %v4387_v28, %v995_v22  ;;  %v1048_v24 = vsel %vm1016_vm2, %v986_v15, %v1032_v19  ;;  %v4424_v28 = vld [vmem:[%s5004_s8] ss:$0 sm:$0xff] }
 0x1e4   : > { %v1035_v25 = vmul.f32 0.01, %v1001_v21  ;;  %3772 = vmatprep.mubr.msk.f32.mxu0 %vm562_vm0, %v1048_v24  ;;  %vm1019_vm3 = vcmp.gt.f32.partialorder %v1001_v21, 0.0 }
 0x1e5   : > { %vm1018_vm4 = vcmp.gt.f32.partialorder %v996_v23, 0.0  ;;  %v1034_v27 = vmul.f32 0.01, %v996_v23  ;;  %3773 = vmatmul.mubr.msk.f32.gmra.mrb[20].mxu0 %vm562_vm0, %v1049_v26 }
 0x1e6   : > { %v1051_v30 = vsel %vm1019_vm3, %v1001_v21, %v1035_v25 }
 0x1e7   : > { %v1050_v29 = vsel %vm1018_vm4, %v996_v23, %v1034_v27 }
 0x1e8   : > { %3775 = vmatprep.mubr.msk.f32.mxu0 %vm562_vm0, %v1050_v29 }
 0x1e9   : > { %3776 = vmatmul.mubr.msk.f32.gmra.mrb[22].mxu0 %vm562_vm0, %v1051_v30 }
 0x2a0   : > { %v3756_v31 = vpop.f32.mrb[8].mxu0 }
 0x2a1   : > { %v1178_v32 = vadd.f32 %v3756_v31, %v4424_v28  ;;  %v1172_v33 = vpop.f32.mrb[9].mxu0 }
 0x2a2   : > { %v1173_v34 = vadd.f32 %v4424_v28, %v1172_v33 }
 0x2a3   : > { %vm1252_vm5 = vcmp.gt.f32.partialorder %v1178_v32, 0.0  ;;  %v1268_v35 = vmul.f32 0.01, %v1178_v32 }
 0x2a4   : > { %vm1251_vm1 = vcmp.gt.f32.partialorder %v1173_v34, 0.0  ;;  %v1267_v36 = vmul.f32 0.01, %v1173_v34  ;;  %v3759_v37 = vpop.f32.mrb[10].mxu0 }
 0x2a5   : > { %v1284_v38 = vsel %vm1252_vm5, %v1178_v32, %v1268_v35  ;;  %v1188_v39 = vadd.f32 %v3759_v37, %v4424_v28  ;;  %v1182_v40 = vpop.f32.mrb[11].mxu0 }
 0x2a6   : > { %1300 = vst.msk [vmem:[%s5011_s15 + $0x8] sm:$0xff] %vm562_vm0, %v1284_v38  ;;  %v1283_v41 = vsel %vm1251_vm1, %v1173_v34, %v1267_v36  ;;  %v1183_v42 = vadd.f32 %v4424_v28, %v1182_v40 }
 0x2a7   : > { %1299 = vst.msk [vmem:[%s5011_s15] sm:$0xff] %vm562_vm0, %v1283_v41  ;;  %vm1254_vm6 = vcmp.gt.f32.partialorder %v1188_v39, 0.0  ;;  %v1270_v43 = vmul.f32 0.01, %v1188_v39 }
 0x2a8   : > { %vm1253_vm7 = vcmp.gt.f32.partialorder %v1183_v42, 0.0  ;;  %v1269_v44 = vmul.f32 0.01, %v1183_v42  ;;  %v3762_v45 = vpop.f32.mrb[12].mxu0 }
 0x2a9   : > { %v1286_v46 = vsel %vm1254_vm6, %v1188_v39, %v1270_v43  ;;  %v1198_v47 = vadd.f32 %v3762_v45, %v4424_v28  ;;  %v1192_v48 = vpop.f32.mrb[13].mxu0 }
 0x2aa   : > { %1302 = vst.msk [vmem:[%s5011_s15 + $0x18] sm:$0xff] %vm562_vm0, %v1286_v46  ;;  %v1285_v49 = vsel %vm1253_vm7, %v1183_v42, %v1269_v44  ;;  %v1193_v50 = vadd.f32 %v4424_v28, %v1192_v48 }
 0x2ab   : > { %1301 = vst.msk [vmem:[%s5011_s15 + $0x10] sm:$0xff] %vm562_vm0, %v1285_v49  ;;  %vm1256_vm8 = vcmp.gt.f32.partialorder %v1198_v47, 0.0  ;;  %v1272_v51 = vmul.f32 0.01, %v1198_v47 }
 0x2ac   : > { %vm1255_vm9 = vcmp.gt.f32.partialorder %v1193_v50, 0.0  ;;  %v1271_v52 = vmul.f32 0.01, %v1193_v50  ;;  %v3765_v53 = vpop.f32.mrb[14].mxu0 }
 0x2ad   : > { %v1288_v54 = vsel %vm1256_vm8, %v1198_v47, %v1272_v51  ;;  %v1208_v55 = vadd.f32 %v3765_v53, %v4424_v28  ;;  %v1202_v56 = vpop.f32.mrb[15].mxu0 }
 0x2ae   : > { %1304 = vst.msk [vmem:[%s5011_s15 + $0x28] sm:$0xff] %vm562_vm0, %v1288_v54  ;;  %v1287_v57 = vsel %vm1255_vm9, %v1193_v50, %v1271_v52  ;;  %v1203_v58 = vadd.f32 %v4424_v28, %v1202_v56 }
 0x2af   : > { %1303 = vst.msk [vmem:[%s5011_s15 + $0x20] sm:$0xff] %vm562_vm0, %v1287_v57  ;;  %vm1258_vm10 = vcmp.gt.f32.partialorder %v1208_v55, 0.0  ;;  %v1274_v59 = vmul.f32 0.01, %v1208_v55 }
 0x2b0   : > { %vm1257_vm11 = vcmp.gt.f32.partialorder %v1203_v58, 0.0  ;;  %v1273_v60 = vmul.f32 0.01, %v1203_v58  ;;  %v3768_v61 = vpop.f32.mrb[16].mxu0 }
 0x2b1   : > { %v1290_v62 = vsel %vm1258_vm10, %v1208_v55, %v1274_v59  ;;  %v1218_v63 = vadd.f32 %v3768_v61, %v4424_v28  ;;  %v1212_v0 = vpop.f32.mrb[17].mxu0 }
 0x2b2   : > { %1306 = vst.msk [vmem:[%s5011_s15 + $0x38] sm:$0xff] %vm562_vm0, %v1290_v62  ;;  %v1289_v1 = vsel %vm1257_vm11, %v1203_v58, %v1273_v60  ;;  %v1213_v2 = vadd.f32 %v4424_v28, %v1212_v0 }
 0x2b3   : > { %1305 = vst.msk [vmem:[%s5011_s15 + $0x30] sm:$0xff] %vm562_vm0, %v1289_v1  ;;  %vm1260_vm12 = vcmp.gt.f32.partialorder %v1218_v63, 0.0  ;;  %v1276_v3 = vmul.f32 0.01, %v1218_v63 }
 0x2b4   : > { %vm1259_vm13 = vcmp.gt.f32.partialorder %v1213_v2, 0.0  ;;  %v1275_v4 = vmul.f32 0.01, %v1213_v2  ;;  %v3771_v5 = vpop.f32.mrb[18].mxu0 }
 0x2b5   : > { %v1292_v6 = vsel %vm1260_vm12, %v1218_v63, %v1276_v3  ;;  %v1228_v7 = vadd.f32 %v3771_v5, %v4424_v28  ;;  %v1222_v8 = vpop.f32.mrb[19].mxu0 }
 0x2b6   : > { %1308 = vst.msk [vmem:[%s5011_s15 + $0x48] sm:$0xff] %vm562_vm0, %v1292_v6  ;;  %v1291_v9 = vsel %vm1259_vm13, %v1213_v2, %v1275_v4  ;;  %v1223_v10 = vadd.f32 %v4424_v28, %v1222_v8 }
 0x2b7   : > { %1307 = vst.msk [vmem:[%s5011_s15 + $0x40] sm:$0xff] %vm562_vm0, %v1291_v9  ;;  %vm1262_vm14 = vcmp.gt.f32.partialorder %v1228_v7, 0.0  ;;  %v1278_v11 = vmul.f32 0.01, %v1228_v7 }
 0x2b8   : > { %vm1261_vm15 = vcmp.gt.f32.partialorder %v1223_v10, 0.0  ;;  %v1277_v12 = vmul.f32 0.01, %v1223_v10  ;;  %v3774_v13 = vpop.f32.mrb[20].mxu0 }
 0x2b9   : > { %v1294_v14 = vsel %vm1262_vm14, %v1228_v7, %v1278_v11  ;;  %v1238_v15 = vadd.f32 %v3774_v13, %v4424_v28  ;;  %v1232_v16 = vpop.f32.mrb[21].mxu0 }
 0x2ba   : > { %1310 = vst.msk [vmem:[%s5011_s15 + $0x58] sm:$0xff] %vm562_vm0, %v1294_v14  ;;  %v1293_v17 = vsel %vm1261_vm15, %v1223_v10, %v1277_v12  ;;  %v1233_v18 = vadd.f32 %v4424_v28, %v1232_v16 }
 0x2bb   : > { %1309 = vst.msk [vmem:[%s5011_s15 + $0x50] sm:$0xff] %vm562_vm0, %v1293_v17  ;;  %vm1264_vm2 = vcmp.gt.f32.partialorder %v1238_v15, 0.0  ;;  %v1280_v19 = vmul.f32 0.01, %v1238_v15 }
 0x2bc   : > { %vm1263_vm3 = vcmp.gt.f32.partialorder %v1233_v18, 0.0  ;;  %v1279_v20 = vmul.f32 0.01, %v1233_v18  ;;  %v3777_v21 = vpop.f32.mrb[22].mxu0 }
 0x2bd   : > { %v1296_v22 = vsel %vm1264_vm2, %v1238_v15, %v1280_v19  ;;  %v1248_v23 = vadd.f32 %v3777_v21, %v4424_v28  ;;  %v1242_v24 = vpop.f32.mrb[23].mxu0 }
 0x2be   : > { %1312 = vst.msk [vmem:[%s5011_s15 + $0x68] sm:$0xff] %vm562_vm0, %v1296_v22  ;;  %v1295_v25 = vsel %vm1263_vm3, %v1233_v18, %v1279_v20  ;;  %v1243_v26 = vadd.f32 %v4424_v28, %v1242_v24 }
 0x2bf   : > { %1311 = vst.msk [vmem:[%s5011_s15 + $0x60] sm:$0xff] %vm562_vm0, %v1295_v25  ;;  %vm1266_vm4 = vcmp.gt.f32.partialorder %v1248_v23, 0.0  ;;  %v1282_v27 = vmul.f32 0.01, %v1248_v23 }
 0x2c0   : > { %vm1265_vm5 = vcmp.gt.f32.partialorder %v1243_v26, 0.0  ;;  %v1281_v29 = vmul.f32 0.01, %v1243_v26 }
 0x2c1   : > { %v1298_v30 = vsel %vm1266_vm4, %v1248_v23, %v1282_v27 }
 0x2c2   : > { %1314 = vst.msk [vmem:[%s5011_s15 + $0x78] sm:$0xff] %vm562_vm0, %v1298_v30  ;;  %v1297_v31 = vsel %vm1265_vm5, %v1243_v26, %v1281_v29 }
 0x2c3   : > { %1313 = vst.msk [vmem:[%s5011_s15 + $0x70] sm:$0xff] %vm562_vm0, %v1297_v31 }
 0x2c4 PF: > { %v1353_v28 = vld [vmem:[%s5005_s9] sm:$0xff]  ;;  %v1354_v32 = vld [vmem:[%s5005_s9 + $0x8] sm:$0xff]  ;;  %vm1318_vm1 = vcmask 130048   ;;  %v1339_v38 = vld [vmem:[%s5011_s15 + $0x10] sm:$0xff]  ;;  %vm1618_vm0 = vcmask 261120  }
 0x2c5   : > { %v1337_v33 = vld [vmem:[%s5011_s15] sm:$0xff]  ;;  %v4515_v34 = vpack.c.bf16 %v1354_v32, %v1353_v28  ;;  %v1338_v36 = vld [vmem:[%s5011_s15 + $0x8] sm:$0xff]  ;;  %v1347_v39 = vld [vmem:[%s5011_s15 + $0x50] sm:$0xff] }
 0x2c6   : > { %3782 = vmatprep.mubr.msk.f32.mxu0 %vm1318_vm1, %v1337_v33  ;;  %v1345_v35 = vld [vmem:[%s5011_s15 + $0x40] sm:$0xff]  ;;  %v1346_v37 = vld [vmem:[%s5011_s15 + $0x48] sm:$0xff]  ;;  %v1340_v43 = vld [vmem:[%s5011_s15 + $0x18] sm:$0xff] }
 0x2c7   : > { %4027 = vmatprep.subr.bf16.mxu0 %v4515_v34  ;;  %4092 = vmatprep.subr.bf16.mxu1 %v4515_v34  ;;  %v1356_v40 = vld [vmem:[%s5007_s11] sm:$0xff]  ;;  %v1357_v41 = vld [vmem:[%s5007_s11 + $0x8] sm:$0xff]  ;;  %v1348_v44 = vld [vmem:[%s5011_s15 + $0x58] sm:$0xff] }
 0x2c8   : > { %4029 = vmatpush3.bf16.msra.mxu0 %v4515_v34  ;;  %4093 = vmatpush3.bf16.msra.mxu1 %v4515_v34  ;;  %v4546_v42 = vpack.c.bf16 %v1357_v41, %v1356_v40  ;;  %v1341_v45 = vld [vmem:[%s5011_s15 + $0x20] sm:$0xff]  ;;  %v1342_v47 = vld [vmem:[%s5011_s15 + $0x28] sm:$0xff]  ;;  %v1343_v49 = vld [vmem:[%s5011_s15 + $0x30] sm:$0xff] }
 0x2c9   : > { %3794 = vmatprep.mubr.msk.f32.mxu1 %vm1318_vm1, %v1345_v35  ;;  %v1349_v46 = vld [vmem:[%s5011_s15 + $0x60] sm:$0xff]  ;;  %v1350_v48 = vld [vmem:[%s5011_s15 + $0x68] sm:$0xff]  ;;  %v1344_v51 = vld [vmem:[%s5011_s15 + $0x38] sm:$0xff] }
 0x2ca   : > { %4031 = vmatprep.subr.bf16.mxu1 %v4546_v42  ;;  %v1351_v50 = vld [vmem:[%s5011_s15 + $0x70] sm:$0xff]  ;;  %v1352_v52 = vld [vmem:[%s5011_s15 + $0x78] sm:$0xff]  ;;  %v1361_v56 = vld [vmem:[%s5009_s13] sm:$0xff] }
 0x2cb   : > { %3783 = vmatmul.mubr.msk.f32.vlgmr.msra.gmra.mrb[0].mxu0 %vm1318_vm1, %v1338_v36  ;;  %3795 = vmatmul.mubr.msk.f32.vlgmr.msra.gmra.mrb[0].mxu1 %vm1318_vm1, %v1346_v37  ;;  %v1358_v53 = vld [vmem:[%s5007_s11 + $0x10] sm:$0xff]  ;;  %v1359_v54 = vld [vmem:[%s5007_s11 + $0x18] sm:$0xff]  ;;  %v1362_v57 = vld [vmem:[%s5009_s13 + $0x8] sm:$0xff] }
 0x2cc   : > { %3785 = vmatprep.mubr.msk.f32.mxu0 %vm1318_vm1, %v1339_v38  ;;  %3797 = vmatprep.mubr.msk.f32.mxu1 %vm1318_vm1, %v1347_v39  ;;  %v4598_v55 = vpack.c.bf16 %v1359_v54, %v1358_v53  ;;  %v4608_v58 = vpack.c.bf16 %v1362_v57, %v1361_v56  ;;  %v4616_v59 = vld [vmem:[%s5006_s10] ss:$0 sm:$0xff] }
 0x2cd   : > { %4033 = vmatpush3.bf16.msra.mxu1 %v4546_v42 }
 0x2ce   : > { %4035 = vmatprep.subr.bf16.mxu1 %v4598_v55  ;;  %4039 = vmatprep.subr.bf16.mxu0 %v4608_v58 }
 0x2cf   : > { %3786 = vmatmul.mubr.msk.f32.gmra.mrb[2].mxu0 %vm1318_vm1, %v1340_v43  ;;  %3798 = vmatmul.mubr.msk.f32.gmra.mrb[2].mxu1 %vm1318_vm1, %v1348_v44 }
 0x2d0   : > { %3788 = vmatprep.mubr.msk.f32.mxu0 %vm1318_vm1, %v1341_v45  ;;  %3800 = vmatprep.mubr.msk.f32.mxu1 %vm1318_vm1, %v1349_v46 }
 0x2d1   : > { %4037 = vmatpush3.bf16.msra.mxu1 %v4598_v55  ;;  %4041 = vmatpush3.bf16.msra.mxu0 %v4608_v58 }
 0x2d2   : > { %4075 = vmatprep.subr.bf16.mxu0 %v4515_v34 }
 0x2d3   : > { %3789 = vmatmul.mubr.msk.f32.gmra.mrb[4].mxu0 %vm1318_vm1, %v1342_v47  ;;  %3801 = vmatmul.mubr.msk.f32.gmra.mrb[4].mxu1 %vm1318_vm1, %v1350_v48 }
 0x2d4   : > { %3791 = vmatprep.mubr.msk.f32.mxu0 %vm1318_vm1, %v1343_v49  ;;  %3803 = vmatprep.mubr.msk.f32.mxu1 %vm1318_vm1, %v1351_v50 }
 0x2d7   : > { %3792 = vmatmul.mubr.msk.f32.gmra.mrb[6].mxu0 %vm1318_vm1, %v1344_v51  ;;  %3804 = vmatmul.mubr.msk.f32.gmra.mrb[6].mxu1 %vm1318_vm1, %v1352_v52 }
 0x39e   : > { %v3784_v60 = vpop.f32.mrb[0].mxu0  ;;  %v3796_v61 = vpop.f32.mrb[0].mxu1 }
 0x39f   : > { %v1491_v62 = vadd.f32 %v3784_v60, %v4616_v59  ;;  %v1485_v63 = vpop.f32.mrb[1].mxu0  ;;  %v1525_v0 = vpop.f32.mrb[1].mxu1  ;;  %v1531_v36 = vadd.f32 %v3796_v61, %v4616_v59 }
 0x3a0   : > { %v1486_v1 = vadd.f32 %v4616_v59, %v1485_v63  ;;  %v1526_v21 = vadd.f32 %v4616_v59, %v1525_v0 }
 0x3a1   : > { %v1581_v2 = vmul.f32 0.01, %v1491_v62  ;;  %vm1565_vm6 = vcmp.gt.f32.partialorder %v1491_v62, 0.0  ;;  %v1589_v44 = vmul.f32 0.01, %v1531_v36  ;;  %vm1573_vm2 = vcmp.gt.f32.partialorder %v1531_v36, 0.0 }
 0x3a2   : > { %vm1564_vm7 = vcmp.gt.f32.partialorder %v1486_v1, 0.0  ;;  %v1580_v3 = vmul.f32 0.01, %v1486_v1  ;;  %v3787_v4 = vpop.f32.mrb[2].mxu0  ;;  %v3799_v5 = vpop.f32.mrb[2].mxu1  ;;  %vm1572_vm12 = vcmp.gt.f32.partialorder %v1526_v21, 0.0 }
 0x3a3   : > { %v1501_v6 = vadd.f32 %v3787_v4, %v4616_v59  ;;  %v1495_v7 = vpop.f32.mrb[3].mxu0  ;;  %v1535_v8 = vpop.f32.mrb[3].mxu1  ;;  %v1597_v11 = vsel %vm1565_vm6, %v1491_v62, %v1581_v2  ;;  %v1588_v28 = vmul.f32 0.01, %v1526_v21  ;;  %v1541_v45 = vadd.f32 %v3799_v5, %v4616_v59 }
 0x3a4   : > { %v1496_v9 = vadd.f32 %v4616_v59, %v1495_v7  ;;  %v1596_v10 = vsel %vm1564_vm7, %v1486_v1, %v1580_v3  ;;  %v1536_v33 = vadd.f32 %v4616_v59, %v1535_v8  ;;  %v1605_v52 = vsel %vm1573_vm2, %v1531_v36, %v1589_v44  ;;  %v4654_v1 = vld [vmem:[%s5008_s12] ss:$0 sm:$0xff] }
 0x3a5   : > { %v1583_v12 = vmul.f32 0.01, %v1501_v6  ;;  %3814 = vmatprep.mubr.msk.f32.mxu1 %vm1618_vm0, %v1596_v10  ;;  %vm1567_vm8 = vcmp.gt.f32.partialorder %v1501_v6, 0.0  ;;  %v1604_v41 = vsel %vm1572_vm12, %v1526_v21, %v1588_v28  ;;  %v1591_v50 = vmul.f32 0.01, %v1541_v45 }
 0x3a6   : > { %vm1566_vm9 = vcmp.gt.f32.partialorder %v1496_v9, 0.0  ;;  %v1582_v13 = vmul.f32 0.01, %v1496_v9  ;;  %v3790_v14 = vpop.f32.mrb[4].mxu0  ;;  %3815 = vmatmul.mubr.msk.f32.vlgmr.msra.gmra.mrb[8].mxu1 %vm1618_vm0, %v1597_v11  ;;  %v3802_v15 = vpop.f32.mrb[4].mxu1  ;;  %vm1574_vm15 = vcmp.gt.f32.partialorder %v1536_v33, 0.0 }
 0x3a7   : > { %v1511_v16 = vadd.f32 %v3790_v14, %v4616_v59  ;;  %v1505_v17 = vpop.f32.mrb[5].mxu0  ;;  %v1545_v18 = vpop.f32.mrb[5].mxu1  ;;  %v1599_v23 = vsel %vm1567_vm8, %v1501_v6, %v1583_v12  ;;  %v1590_v39 = vmul.f32 0.01, %v1536_v33  ;;  %v1551_v51 = vadd.f32 %v3802_v15, %v4616_v59 }
 0x3a8   : > { %v1506_v19 = vadd.f32 %v4616_v59, %v1505_v17  ;;  %v1598_v20 = vsel %vm1566_vm9, %v1496_v9, %v1582_v13  ;;  %v1546_v43 = vadd.f32 %v4616_v59, %v1545_v18  ;;  %vm1575_vm4 = vcmp.gt.f32.partialorder %v1541_v45, 0.0 }
 0x3a9   : > { %v1585_v22 = vmul.f32 0.01, %v1511_v16  ;;  %3817 = vmatprep.mubr.msk.f32.mxu1 %vm1618_vm0, %v1598_v20  ;;  %vm1569_vm10 = vcmp.gt.f32.partialorder %v1511_v16, 0.0  ;;  %v1606_v48 = vsel %vm1574_vm15, %v1536_v33, %v1590_v39  ;;  %v1593_v56 = vmul.f32 0.01, %v1551_v51 }
 0x3aa   : > { %vm1568_vm11 = vcmp.gt.f32.partialorder %v1506_v19, 0.0  ;;  %v1584_v24 = vmul.f32 0.01, %v1506_v19  ;;  %v3793_v25 = vpop.f32.mrb[6].mxu0  ;;  %3818 = vmatmul.mubr.msk.f32.gmra.mrb[10].mxu1 %vm1618_vm0, %v1599_v23  ;;  %v3805_v26 = vpop.f32.mrb[6].mxu1  ;;  %vm1576_vm3 = vcmp.gt.f32.partialorder %v1546_v43, 0.0  ;;  %v1607_v60 = vsel %vm1575_vm4, %v1541_v45, %v1591_v50 }
 0x3ab   : > { %v1521_v27 = vadd.f32 %v3793_v25, %v4616_v59  ;;  %v1515_v29 = vpop.f32.mrb[7].mxu0  ;;  %v1555_v30 = vpop.f32.mrb[7].mxu1  ;;  %v1601_v37 = vsel %vm1569_vm10, %v1511_v16, %v1585_v22  ;;  %v1592_v47 = vmul.f32 0.01, %v1546_v43  ;;  %v1561_v57 = vadd.f32 %v3805_v26, %v4616_v59 }
 0x3ac   : > { %v1516_v31 = vadd.f32 %v4616_v59, %v1515_v29  ;;  %v1600_v32 = vsel %vm1568_vm11, %v1506_v19, %v1584_v24  ;;  %v1556_v49 = vadd.f32 %v4616_v59, %v1555_v30  ;;  %vm1577_vm6 = vcmp.gt.f32.partialorder %v1551_v51, 0.0 }
 0x3ad   : > { %v1587_v35 = vmul.f32 0.01, %v1521_v27  ;;  %3820 = vmatprep.mubr.msk.f32.mxu1 %vm1618_vm0, %v1600_v32  ;;  %vm1571_vm13 = vcmp.gt.f32.partialorder %v1521_v27, 0.0  ;;  %v1608_v54 = vsel %vm1576_vm3, %v1546_v43, %v1592_v47  ;;  %v1595_v62 = vmul.f32 0.01, %v1561_v57 }
 0x3ae   : > { %vm1570_vm14 = vcmp.gt.f32.partialorder %v1516_v31, 0.0  ;;  %v1586_v38 = vmul.f32 0.01, %v1516_v31  ;;  %3821 = vmatmul.mubr.msk.f32.gmra.mrb[12].mxu1 %vm1618_vm0, %v1601_v37  ;;  %v1594_v53 = vmul.f32 0.01, %v1556_v49  ;;  %vm1578_vm5 = vcmp.gt.f32.partialorder %v1556_v49, 0.0 }
 0x3af   : > { %v1603_v46 = vsel %vm1571_vm13, %v1521_v27, %v1587_v35  ;;  %v1609_v63 = vsel %vm1577_vm6, %v1551_v51, %v1593_v56  ;;  %vm1579_vm7 = vcmp.gt.f32.partialorder %v1561_v57, 0.0 }
 0x3b0   : > { %v1602_v40 = vsel %vm1570_vm14, %v1516_v31, %v1586_v38  ;;  %v1610_v61 = vsel %vm1578_vm5, %v1556_v49, %v1594_v53  ;;  %v1611_v0 = vsel %vm1579_vm7, %v1561_v57, %v1595_v62 }
 0x3b1   : > { %3823 = vmatprep.mubr.msk.f32.mxu1 %vm1618_vm0, %v1602_v40 }
 0x3b2   : > { %3824 = vmatmul.mubr.msk.f32.gmra.mrb[14].mxu1 %vm1618_vm0, %v1603_v46 }
 0x3b3   : > { %3826 = vmatprep.mubr.msk.f32.mxu1 %vm1618_vm0, %v1604_v41 }
 0x3b6   : > { %3827 = vmatmul.mubr.msk.f32.gmra.mrb[16].mxu1 %vm1618_vm0, %v1605_v52 }
 0x3b7   : > { %3829 = vmatprep.mubr.msk.f32.mxu1 %vm1618_vm0, %v1606_v48 }
 0x3ba   : > { %3830 = vmatmul.mubr.msk.f32.gmra.mrb[18].mxu1 %vm1618_vm0, %v1607_v60 }
 0x3bb   : > { %3832 = vmatprep.mubr.msk.f32.mxu1 %vm1618_vm0, %v1608_v54 }
 0x3be   : > { %3833 = vmatmul.mubr.msk.f32.gmra.mrb[20].mxu1 %vm1618_vm0, %v1609_v63 }
 0x3bf   : > { %3835 = vmatprep.mubr.msk.f32.mxu1 %vm1618_vm0, %v1610_v61 }
 0x3c2   : > { %3836 = vmatmul.mubr.msk.f32.gmra.mrb[22].mxu1 %vm1618_vm0, %v1611_v0 }
 0x479   : > { %v3816_v2 = vpop.f32.mrb[8].mxu1 }
 0x47a   : > { %v1739_v3 = vadd.f32 %v3816_v2, %v4654_v1  ;;  %v1733_v4 = vpop.f32.mrb[9].mxu1 }
 0x47b   : > { %v1734_v5 = vadd.f32 %v4654_v1, %v1733_v4 }
 0x47c   : > { %v1829_v6 = vmul.f32 0.01, %v1739_v3  ;;  %vm1813_vm8 = vcmp.gt.f32.partialorder %v1739_v3, 0.0 }
 0x47d   : > { %vm1812_vm9 = vcmp.gt.f32.partialorder %v1734_v5, 0.0  ;;  %v1828_v7 = vmul.f32 0.01, %v1734_v5  ;;  %v3819_v8 = vpop.f32.mrb[10].mxu1 }
 0x47e   : > { %v1749_v9 = vadd.f32 %v3819_v8, %v4654_v1  ;;  %v1743_v10 = vpop.f32.mrb[11].mxu1  ;;  %v1845_v13 = vsel %vm1813_vm8, %v1739_v3, %v1829_v6 }
 0x47f   : > { %v1744_v11 = vadd.f32 %v4654_v1, %v1743_v10  ;;  %v1844_v12 = vsel %vm1812_vm9, %v1734_v5, %v1828_v7  ;;  %v4691_v7 = vld [vmem:[%s4251_s26] sm:$0xff]  ;;  %v4148_v10 = vmov 0.0  }
 0x480   : > { %v1831_v14 = vmul.f32 0.01, %v1749_v9  ;;  %3842 = vmatprep.mubr.msk.f32.mxu0 %vm1318_vm1, %v1844_v12  ;;  %vm1815_vm10 = vcmp.gt.f32.partialorder %v1749_v9, 0.0  ;;  %v2127_v8 = vunpack.c.0.s8 %v4691_v7  ;;  %1320 = vst.msk [vmem:[#allocation2 + $0x8] sm:$0xff] %vm1318_vm1, %v4148_v10  ;;  %1319 = vst.msk [vmem:[#allocation2] sm:$0xff] %vm1318_vm1, %v4148_v10 }
 0x481   : > { %vm1814_vm11 = vcmp.gt.f32.partialorder %v1744_v11, 0.0  ;;  %v1830_v15 = vmul.f32 0.01, %v1744_v11  ;;  %v3822_v16 = vpop.f32.mrb[12].mxu1  ;;  %3843 = vmatmul.mubr.msk.f32.vlgmr.msra.gmra.mrb[8].mxu0 %vm1318_vm1, %v1845_v13  ;;  %1321 = vst.msk [vmem:[#allocation2 + $0x10] sm:$0xff] %vm1318_vm1, %v4148_v10  ;;  %1322 = vst.msk [vmem:[#allocation2 + $0x18] sm:$0xff] %vm1318_vm1, %v4148_v10 }
 0x482   : > { %v1759_v17 = vadd.f32 %v3822_v16, %v4654_v1  ;;  %v1753_v18 = vpop.f32.mrb[13].mxu1  ;;  %4077 = vmatpush3.bf16.msra.mxu0 %v4515_v34  ;;  %v1847_v22 = vsel %vm1815_vm10, %v1749_v9, %v1831_v14  ;;  %v2143_v9 = vcvt.s32.f32 %v2127_v8  ;;  %1323 = vst.msk [vmem:[#allocation2 + $0x20] sm:$0xff] %vm1318_vm1, %v4148_v10  ;;  %1324 = vst.msk [vmem:[#allocation2 + $0x28] sm:$0xff] %vm1318_vm1, %v4148_v10 }
 0x483   : > { %v1754_v19 = vadd.f32 %v4654_v1, %v1753_v18  ;;  %v1846_v20 = vsel %vm1814_vm11, %v1744_v11, %v1830_v15  ;;  %4087 = vmatprep.subr.bf16.mxu0 %v4608_v58  ;;  %1325 = vst.msk [vmem:[#allocation2 + $0x30] sm:$0xff] %vm1318_vm1, %v4148_v10  ;;  %1326 = vst.msk [vmem:[#allocation2 + $0x38] sm:$0xff] %vm1318_vm1, %v4148_v10  ;;  %v4713_v11 = vld [vmem:[%s5010_s14] ss:$0 sm:$0xff] }
 0x484   : > { %v1833_v21 = vmul.f32 0.01, %v1759_v17  ;;  %3845 = vmatprep.mubr.msk.f32.mxu0 %vm1318_vm1, %v1846_v20  ;;  %vm1817_vm12 = vcmp.gt.f32.partialorder %v1759_v17, 0.0  ;;  %3898 = vmatprep.mubr.f32.mxu1 %v2143_v9  ;;  %1327 = vst.msk [vmem:[#allocation2 + $0x40] sm:$0xff] %vm1318_vm1, %v4148_v10  ;;  %1328 = vst.msk [vmem:[#allocation2 + $0x48] sm:$0xff] %vm1318_vm1, %v4148_v10 }
 0x485   : > { %vm1816_vm13 = vcmp.gt.f32.partialorder %v1754_v19, 0.0  ;;  %v1832_v23 = vmul.f32 0.01, %v1754_v19  ;;  %v3825_v24 = vpop.f32.mrb[14].mxu1  ;;  %3846 = vmatmul.mubr.msk.f32.gmra.mrb[10].mxu0 %vm1318_vm1, %v1847_v22  ;;  %1329 = vst.msk [vmem:[#allocation2 + $0x50] sm:$0xff] %vm1318_vm1, %v4148_v10  ;;  %1330 = vst.msk [vmem:[#allocation2 + $0x58] sm:$0xff] %vm1318_vm1, %v4148_v10 }
 0x486   : > { %v1769_v25 = vadd.f32 %v3825_v24, %v4654_v1  ;;  %v1763_v26 = vpop.f32.mrb[15].mxu1  ;;  %v1849_v30 = vsel %vm1817_vm12, %v1759_v17, %v1833_v21  ;;  %1331 = vst.msk [vmem:[#allocation2 + $0x60] sm:$0xff] %vm1318_vm1, %v4148_v10  ;;  %1332 = vst.msk [vmem:[#allocation2 + $0x68] sm:$0xff] %vm1318_vm1, %v4148_v10 }
 0x487   : > { %v1764_v34 = vadd.f32 %v4654_v1, %v1763_v26  ;;  %v1848_v27 = vsel %vm1816_vm13, %v1754_v19, %v1832_v23  ;;  %1333 = vst.msk [vmem:[#allocation2 + $0x70] sm:$0xff] %vm1318_vm1, %v4148_v10  ;;  %1334 = vst.msk [vmem:[#allocation2 + $0x78] sm:$0xff] %vm1318_vm1, %v4148_v10 }
 0x488   : > { %v1835_v29 = vmul.f32 0.01, %v1769_v25  ;;  %3848 = vmatprep.mubr.msk.f32.mxu0 %vm1318_vm1, %v1848_v27  ;;  %vm1819_vm14 = vcmp.gt.f32.partialorder %v1769_v25, 0.0 }
 0x489   : > { %vm1818_vm15 = vcmp.gt.f32.partialorder %v1764_v34, 0.0  ;;  %v1834_v31 = vmul.f32 0.01, %v1764_v34  ;;  %v3828_v28 = vpop.f32.mrb[16].mxu1  ;;  %3849 = vmatmul.mubr.msk.f32.gmra.mrb[12].mxu0 %vm1318_vm1, %v1849_v30 }
 0x48a   : > { %v1779_v32 = vadd.f32 %v3828_v28, %v4654_v1  ;;  %v1773_v33 = vpop.f32.mrb[17].mxu1  ;;  %v1851_v38 = vsel %vm1819_vm14, %v1769_v25, %v1835_v29 }
 0x48b   : > { %v1774_v35 = vadd.f32 %v4654_v1, %v1773_v33  ;;  %v1850_v36 = vsel %vm1818_vm15, %v1764_v34, %v1834_v31 }
 0x48c   : > { %v1837_v37 = vmul.f32 0.01, %v1779_v32  ;;  %3851 = vmatprep.mubr.msk.f32.mxu0 %vm1318_vm1, %v1850_v36  ;;  %vm1821_vm2 = vcmp.gt.f32.partialorder %v1779_v32, 0.0 }
 0x48d   : > { %vm1820_vm3 = vcmp.gt.f32.partialorder %v1774_v35, 0.0  ;;  %v1836_v39 = vmul.f32 0.01, %v1774_v35  ;;  %v3831_v40 = vpop.f32.mrb[18].mxu1  ;;  %3852 = vmatmul.mubr.msk.f32.gmra.mrb[14].mxu0 %vm1318_vm1, %v1851_v38 }
 0x48e   : > { %v1789_v41 = vadd.f32 %v3831_v40, %v4654_v1  ;;  %v1783_v43 = vpop.f32.mrb[19].mxu1  ;;  %v1853_v47 = vsel %vm1821_vm2, %v1779_v32, %v1837_v37 }
 0x48f   : > { %v1784_v44 = vadd.f32 %v4654_v1, %v1783_v43  ;;  %v1852_v45 = vsel %vm1820_vm3, %v1774_v35, %v1836_v39 }
 0x490   : > { %v1839_v46 = vmul.f32 0.01, %v1789_v41  ;;  %3854 = vmatprep.mubr.msk.f32.mxu0 %vm1318_vm1, %v1852_v45  ;;  %vm1823_vm4 = vcmp.gt.f32.partialorder %v1789_v41, 0.0 }
 0x491   : > { %vm1822_vm5 = vcmp.gt.f32.partialorder %v1784_v44, 0.0  ;;  %v1838_v48 = vmul.f32 0.01, %v1784_v44  ;;  %v3834_v49 = vpop.f32.mrb[20].mxu1  ;;  %3855 = vmatmul.mubr.msk.f32.gmra.mrb[16].mxu0 %vm1318_vm1, %v1853_v47 }
 0x492   : > { %v1799_v50 = vadd.f32 %v3834_v49, %v4654_v1  ;;  %v1793_v51 = vpop.f32.mrb[21].mxu1  ;;  %v1855_v56 = vsel %vm1823_vm4, %v1789_v41, %v1839_v46 }
 0x493   : > { %v1794_v52 = vadd.f32 %v4654_v1, %v1793_v51  ;;  %v1854_v53 = vsel %vm1822_vm5, %v1784_v44, %v1838_v48 }
 0x494   : > { %v1841_v54 = vmul.f32 0.01, %v1799_v50  ;;  %3857 = vmatprep.mubr.msk.f32.mxu0 %vm1318_vm1, %v1854_v53  ;;  %vm1825_vm6 = vcmp.gt.f32.partialorder %v1799_v50, 0.0 }
 0x495   : > { %vm1824_vm7 = vcmp.gt.f32.partialorder %v1794_v52, 0.0  ;;  %v1840_v57 = vmul.f32 0.01, %v1794_v52  ;;  %v3837_v60 = vpop.f32.mrb[22].mxu1  ;;  %3858 = vmatmul.mubr.msk.f32.gmra.mrb[18].mxu0 %vm1318_vm1, %v1855_v56 }
 0x496   : > { %v1809_v61 = vadd.f32 %v3837_v60, %v4654_v1  ;;  %v1803_v62 = vpop.f32.mrb[23].mxu1  ;;  %v1857_v3 = vsel %vm1825_vm6, %v1799_v50, %v1841_v54 }
 0x497   : > { %v1804_v63 = vadd.f32 %v4654_v1, %v1803_v62  ;;  %v1856_v0 = vsel %vm1824_vm7, %v1794_v52, %v1840_v57 }
 0x498   : > { %v1843_v2 = vmul.f32 0.01, %v1809_v61  ;;  %3860 = vmatprep.mubr.msk.f32.mxu0 %vm1318_vm1, %v1856_v0  ;;  %vm1827_vm8 = vcmp.gt.f32.partialorder %v1809_v61, 0.0 }
 0x499   : > { %vm1826_vm9 = vcmp.gt.f32.partialorder %v1804_v63, 0.0  ;;  %v1842_v4 = vmul.f32 0.01, %v1804_v63  ;;  %3861 = vmatmul.mubr.msk.f32.gmra.mrb[20].mxu0 %vm1318_vm1, %v1857_v3 }
 0x49a   : > { %v1859_v6 = vsel %vm1827_vm8, %v1809_v61, %v1843_v2 }
 0x49b   : > { %v1858_v5 = vsel %vm1826_vm9, %v1804_v63, %v1842_v4 }
 0x49c   : > { %3863 = vmatprep.mubr.msk.f32.mxu0 %vm1318_vm1, %v1858_v5 }
 0x49d   : > { %3864 = vmatmul.mubr.msk.f32.gmra.mrb[22].mxu0 %vm1318_vm1, %v1859_v6 }
 0x554   : > { %v3844_v12 = vpop.f32.mrb[8].mxu0 }
 0x555   : > { %v1986_v13 = vadd.f32 %v3844_v12, %v4713_v11  ;;  %v1980_v14 = vpop.f32.mrb[9].mxu0 }
 0x556   : > { %v1981_v15 = vadd.f32 %v4713_v11, %v1980_v14 }
 0x557   : > { %vm2060_vm10 = vcmp.gt.f32.partialorder %v1986_v13, 0.0  ;;  %v2076_v16 = vmul.f32 0.01, %v1986_v13 }
 0x558   : > { %vm2059_vm11 = vcmp.gt.f32.partialorder %v1981_v15, 0.0  ;;  %v2075_v17 = vmul.f32 0.01, %v1981_v15  ;;  %v3847_v18 = vpop.f32.mrb[10].mxu0 }
 0x559   : > { %v1996_v19 = vadd.f32 %v3847_v18, %v4713_v11  ;;  %v1990_v20 = vpop.f32.mrb[11].mxu0  ;;  %v2092_v21 = vsel %vm2060_vm10, %v1986_v13, %v2076_v16 }
 0x55a   : > { %v1991_v22 = vadd.f32 %v4713_v11, %v1990_v20  ;;  %v2091_v23 = vsel %vm2059_vm11, %v1981_v15, %v2075_v17 }
 0x55b   : > { %vm2062_vm12 = vcmp.gt.f32.partialorder %v1996_v19, 0.0  ;;  %v2078_v24 = vmul.f32 0.01, %v1996_v19  ;;  %v4042_v25 = vpack.c.bf16 %v2092_v21, %v2091_v23 }
 0x55c   : > { %vm2061_vm13 = vcmp.gt.f32.partialorder %v1991_v22, 0.0  ;;  %v2077_v26 = vmul.f32 0.01, %v1991_v22  ;;  %v3850_v34 = vpop.f32.mrb[12].mxu0 }
 0x55d   : > { %v2006_v27 = vadd.f32 %v3850_v34, %v4713_v11  ;;  %v2000_v29 = vpop.f32.mrb[13].mxu0  ;;  %4043 = vmatprep.subr.bf16.mxu1 %v4042_v25  ;;  %v2094_v30 = vsel %vm2062_vm12, %v1996_v19, %v2078_v24  ;;  %v2129_v34 = vunpack.c.2.s8 %v4691_v7 }
 0x55e   : > { %v2001_v31 = vadd.f32 %v4713_v11, %v2000_v29  ;;  %4045 = vmatpush3.bf16.msra.mxu1 %v4042_v25  ;;  %v2093_v28 = vsel %vm2061_vm13, %v1991_v22, %v2077_v26  ;;  %v2128_v25 = vunpack.c.1.s8 %v4691_v7  ;;  %v2124_v29 = vld [vmem:[%s4251_s26 + $0x8] sm:$0xff] }
 0x55f   : > { %vm2064_vm14 = vcmp.gt.f32.partialorder %v2006_v27, 0.0  ;;  %v2080_v32 = vmul.f32 0.01, %v2006_v27  ;;  %v4046_v33 = vpack.c.bf16 %v2094_v30, %v2093_v28  ;;  %v2130_v30 = vunpack.c.3.s8 %v4691_v7 }
 0x560   : > { %vm2063_vm15 = vcmp.gt.f32.partialorder %v2001_v31, 0.0  ;;  %v2079_v35 = vmul.f32 0.01, %v2001_v31  ;;  %v3853_v36 = vpop.f32.mrb[14].mxu0  ;;  %v2131_v28 = vunpack.c.0.s8 %v2124_v29  ;;  %v2134_v7 = vunpack.c.3.s8 %v2124_v29 }
 0x561   : > { %v2016_v37 = vadd.f32 %v3853_v36, %v4713_v11  ;;  %v2010_v38 = vpop.f32.mrb[15].mxu0  ;;  %4047 = vmatprep.subr.bf16.mxu1 %v4046_v33  ;;  %v2096_v39 = vsel %vm2064_vm14, %v2006_v27, %v2080_v32  ;;  %v2146_v32 = vcvt.s32.f32 %v2130_v30  ;;  %v2133_v36 = vunpack.c.2.s8 %v2124_v29 }
 0x562   : > { %v2011_v40 = vadd.f32 %v4713_v11, %v2010_v38  ;;  %4049 = vmatpush3.bf16.msra.mxu1 %v4046_v33  ;;  %v2095_v41 = vsel %vm2063_vm15, %v2001_v31, %v2079_v35  ;;  %v2145_v31 = vcvt.s32.f32 %v2129_v34  ;;  %v2132_v33 = vunpack.c.1.s8 %v2124_v29  ;;  %v2115_v34 = vld [vmem:[#allocation2 + $0x40] sm:$0xff] }
 0x563   : > { %vm2066_vm2 = vcmp.gt.f32.partialorder %v2016_v37, 0.0  ;;  %v2082_v43 = vmul.f32 0.01, %v2016_v37  ;;  %v4050_v44 = vpack.c.bf16 %v2096_v39, %v2095_v41  ;;  %v2147_v35 = vcvt.s32.f32 %v2131_v28  ;;  %v2118_v28 = vld [vmem:[#allocation2 + $0x58] sm:$0xff] }
 0x564   : > { %vm2065_vm3 = vcmp.gt.f32.partialorder %v2011_v40, 0.0  ;;  %v2081_v45 = vmul.f32 0.01, %v2011_v40  ;;  %v3856_v46 = vpop.f32.mrb[16].mxu0  ;;  %v2148_v38 = vcvt.s32.f32 %v2132_v33  ;;  %v2149_v39 = vcvt.s32.f32 %v2133_v36 }
 0x565   : > { %v2026_v47 = vadd.f32 %v3856_v46, %v4713_v11  ;;  %v2020_v48 = vpop.f32.mrb[17].mxu0  ;;  %4051 = vmatprep.subr.bf16.mxu1 %v4050_v44  ;;  %v2098_v49 = vsel %vm2066_vm2, %v2016_v37, %v2082_v43  ;;  %v2125_v37 = vld [vmem:[%s4251_s26 + $0x10] sm:$0xff]  ;;  %v2150_v41 = vcvt.s32.f32 %v2134_v7  ;;  %v2126_v46 = vld [vmem:[%s4251_s26 + $0x18] sm:$0xff]  ;;  %v2120_v7 = vld [vmem:[#allocation2 + $0x68] sm:$0xff] }
 0x566   : > { %v2021_v50 = vadd.f32 %v4713_v11, %v2020_v48  ;;  %4053 = vmatpush3.bf16.msra.mxu1 %v4050_v44  ;;  %v2097_v51 = vsel %vm2065_vm3, %v2011_v40, %v2081_v45  ;;  %v2135_v40 = vunpack.c.0.s8 %v2125_v37  ;;  %v2136_v43 = vunpack.c.1.s8 %v2125_v37 }
 0x567   : > { %vm2068_vm4 = vcmp.gt.f32.partialorder %v2026_v47, 0.0  ;;  %v2084_v52 = vmul.f32 0.01, %v2026_v47  ;;  %v4054_v53 = vpack.c.bf16 %v2098_v49, %v2097_v51  ;;  %v2137_v45 = vunpack.c.2.s8 %v2125_v37 }
 0x568   : > { %vm2067_vm5 = vcmp.gt.f32.partialorder %v2021_v50, 0.0  ;;  %v2083_v54 = vmul.f32 0.01, %v2021_v50  ;;  %v3859_v56 = vpop.f32.mrb[18].mxu0  ;;  %v2151_v44 = vcvt.s32.f32 %v2135_v40  ;;  %v2139_v49 = vunpack.c.0.s8 %v2126_v46  ;;  %v2119_v40 = vld [vmem:[#allocation2 + $0x60] sm:$0xff] }
 0x569   : > { %v2036_v57 = vadd.f32 %v3859_v56, %v4713_v11  ;;  %v2030_v60 = vpop.f32.mrb[19].mxu0  ;;  %4055 = vmatprep.subr.bf16.mxu1 %v4054_v53  ;;  %v2100_v61 = vsel %vm2068_vm4, %v2026_v47, %v2084_v52  ;;  %v2138_v47 = vunpack.c.3.s8 %v2125_v37  ;;  %v2153_v48 = vcvt.s32.f32 %v2137_v45 }
 0x56a   : > { %v2031_v62 = vadd.f32 %v4713_v11, %v2030_v60  ;;  %4057 = vmatpush3.bf16.msra.mxu1 %v4054_v53  ;;  %v2099_v63 = vsel %vm2067_vm5, %v2021_v50, %v2083_v54  ;;  %v2140_v51 = vunpack.c.1.s8 %v2126_v46  ;;  %v2155_v52 = vcvt.s32.f32 %v2139_v49  ;;  %v2108_v60 = vld [vmem:[#allocation2 + $0x8] sm:$0xff] }
 0x56b   : > { %vm2070_vm6 = vcmp.gt.f32.partialorder %v2036_v57, 0.0  ;;  %v2086_v0 = vmul.f32 0.01, %v2036_v57  ;;  %v4058_v2 = vpack.c.bf16 %v2100_v61, %v2099_v63  ;;  %v2154_v50 = vcvt.s32.f32 %v2138_v47  ;;  %v2107_v61 = vld [vmem:[#allocation2] sm:$0xff] }
 0x56c   : > { %vm2069_vm7 = vcmp.gt.f32.partialorder %v2031_v62, 0.0  ;;  %v2085_v3 = vmul.f32 0.01, %v2031_v62  ;;  %v3862_v4 = vpop.f32.mrb[20].mxu0  ;;  %v2141_v53 = vunpack.c.2.s8 %v2126_v46  ;;  %v2142_v54 = vunpack.c.3.s8 %v2126_v46 }
 0x56d   : > { %v2046_v5 = vadd.f32 %v3862_v4, %v4713_v11  ;;  %v2040_v6 = vpop.f32.mrb[21].mxu0  ;;  %4059 = vmatprep.subr.bf16.mxu1 %v4058_v2  ;;  %v2102_v8 = vsel %vm2070_vm6, %v2036_v57, %v2086_v0  ;;  %v2109_v4 = vld [vmem:[#allocation2 + $0x10] sm:$0xff] }
 0x56e   : > { %v2041_v9 = vadd.f32 %v4713_v11, %v2040_v6  ;;  %4061 = vmatpush3.bf16.msra.mxu1 %v4058_v2  ;;  %v2101_v10 = vsel %vm2069_vm7, %v2031_v62, %v2085_v3  ;;  %v2157_v56 = vcvt.s32.f32 %v2141_v53  ;;  %v2158_v57 = vcvt.s32.f32 %v2142_v54  ;;  %v2110_v3 = vld [vmem:[#allocation2 + $0x18] sm:$0xff] }
 0x56f   : > { %vm2072_vm8 = vcmp.gt.f32.partialorder %v2046_v5, 0.0  ;;  %v2088_v12 = vmul.f32 0.01, %v2046_v5  ;;  %v4062_v13 = vpack.c.bf16 %v2102_v8, %v2101_v10  ;;  %v2112_v10 = vld [vmem:[#allocation2 + $0x28] sm:$0xff] }
 0x570   : > { %vm2071_vm9 = vcmp.gt.f32.partialorder %v2041_v9, 0.0  ;;  %v2087_v14 = vmul.f32 0.01, %v2041_v9  ;;  %v3865_v15 = vpop.f32.mrb[22].mxu0 }
 0x571   : > { %v2056_v16 = vadd.f32 %v3865_v15, %v4713_v11  ;;  %v2050_v17 = vpop.f32.mrb[23].mxu0  ;;  %4063 = vmatprep.subr.bf16.mxu1 %v4062_v13  ;;  %v2104_v18 = vsel %vm2072_vm8, %v2046_v5, %v2088_v12  ;;  %v2111_v12 = vld [vmem:[#allocation2 + $0x20] sm:$0xff] }
 0x572   : > { %v2051_v19 = vadd.f32 %v4713_v11, %v2050_v17  ;;  %4065 = vmatpush3.bf16.msra.mxu1 %v4062_v13  ;;  %v2103_v20 = vsel %vm2071_vm9, %v2041_v9, %v2087_v14  ;;  %v2144_v11 = vcvt.s32.f32 %v2128_v25  ;;  %v2114_v17 = vld [vmem:[#allocation2 + $0x38] sm:$0xff]  ;;  %v2116_v25 = vld [vmem:[#allocation2 + $0x48] sm:$0xff] }
 0x573   : > { %vm2074_vm10 = vcmp.gt.f32.partialorder %v2056_v16, 0.0  ;;  %v2090_v21 = vmul.f32 0.01, %v2056_v16  ;;  %v4066_v22 = vpack.c.bf16 %v2104_v18, %v2103_v20 }
 0x574   : > { %vm2073_vm11 = vcmp.gt.f32.partialorder %v2051_v19, 0.0  ;;  %v2089_v23 = vmul.f32 0.01, %v2051_v19 }
 0x575   : > { %4067 = vmatprep.subr.bf16.mxu1 %v4066_v22  ;;  %v2106_v24 = vsel %vm2074_vm10, %v2056_v16, %v2090_v21 }
 0x576   : > { %4069 = vmatpush3.bf16.msra.mxu1 %v4066_v22  ;;  %v2105_v26 = vsel %vm2073_vm11, %v2051_v19, %v2089_v23  ;;  %v2113_v19 = vld [vmem:[#allocation2 + $0x30] sm:$0xff] }
 0x577   : > { %v4070_v27 = vpack.c.bf16 %v2106_v24, %v2105_v26 }
 0x579   : > { %4071 = vmatprep.subr.bf16.mxu1 %v4070_v27 }
 0x57a   : > { %4073 = vmatpush3.bf16.msra.mxu1 %v4070_v27 }
 0x57b   : > { %4079 = vmatprep.subr.bf16.mxu1 %v4546_v42 }
 0x57d   : > { %3899 = vmatmul.mubr.f32.vlgmr.msra.gmra.mrb[24].mxu1 %v2144_v11 }
 0x57e   : > { %3901 = vmatprep.mubr.f32.mxu1 %v2145_v31  ;;  %4081 = vmatpush3.bf16.msra.mxu1 %v4546_v42  ;;  %v2152_v42 = vcvt.s32.f32 %v2136_v43 }
 0x57f   : > { %4083 = vmatprep.subr.bf16.mxu1 %v4598_v55 }
 0x581   : > { %3902 = vmatmul.mubr.f32.gmra.mrb[26].mxu1 %v2146_v32 }
 0x582   : > { %3904 = vmatprep.mubr.f32.mxu1 %v2147_v35  ;;  %4085 = vmatpush3.bf16.msra.mxu1 %v4598_v55  ;;  %v2156_v55 = vcvt.s32.f32 %v2140_v51 }
 0x585   : > { %3905 = vmatmul.mubr.f32.gmra.mrb[28].mxu1 %v2148_v38 }
 0x586   : > { %3907 = vmatprep.mubr.f32.mxu1 %v2149_v39 }
 0x589   : > { %3908 = vmatmul.mubr.f32.gmra.mrb[30].mxu1 %v2150_v41 }
 0x58a   : > { %3910 = vmatprep.mubr.f32.mxu1 %v2151_v44 }
 0x58d   : > { %3911 = vmatmul.mubr.f32.gmra.mrb[32].mxu1 %v2152_v42  ;;  %v2122_v42 = vld [vmem:[#allocation2 + $0x78] sm:$0xff] }
 0x58e   : > { %3913 = vmatprep.mubr.f32.mxu1 %v2153_v48  ;;  %v2121_v48 = vld [vmem:[#allocation2 + $0x70] sm:$0xff] }
 0x591   : > { %3914 = vmatmul.mubr.f32.gmra.mrb[34].mxu1 %v2154_v50 }
 0x592   : > { %3916 = vmatprep.mubr.f32.mxu1 %v2155_v52 }
 0x595   : > { %3917 = vmatmul.mubr.f32.gmra.mrb[36].mxu1 %v2156_v55 }
 0x596   : > { %3919 = vmatprep.mubr.f32.mxu1 %v2157_v56 }
 0x599   : > { %3920 = vmatmul.mubr.f32.gmra.mrb[38].mxu1 %v2158_v57 }
 0x650   : > { %v3900_v62 = vpop.f32.mrb[24].mxu1 }
 0x651   : > { %v2305_v63 = vadd.f32 %v3900_v62, %v2108_v60  ;;  %v2225_v0 = vpop.f32.mrb[25].mxu1 }
 0x652   : > { %v2304_v2 = vadd.f32 %v2225_v0, %v2107_v61 }
 0x653   : > { %2321 = vst.msk [vmem:[#allocation2 + $0x8] sm:$0xff] %vm1318_vm1, %v2305_v63 }
 0x654   : > { %2320 = vst.msk [vmem:[#allocation2] sm:$0xff] %vm1318_vm1, %v2304_v2  ;;  %v3903_v5 = vpop.f32.mrb[26].mxu1 }
 0x655   : > { %v2307_v6 = vadd.f32 %v3903_v5, %v2110_v3  ;;  %v2235_v8 = vpop.f32.mrb[27].mxu1 }
 0x656   : > { %v2306_v9 = vadd.f32 %v2235_v8, %v2109_v4 }
 0x657   : > { %2323 = vst.msk [vmem:[#allocation2 + $0x18] sm:$0xff] %vm1318_vm1, %v2307_v6 }
 0x658   : > { %2322 = vst.msk [vmem:[#allocation2 + $0x10] sm:$0xff] %vm1318_vm1, %v2306_v9  ;;  %v3906_v13 = vpop.f32.mrb[28].mxu1 }
 0x659   : > { %v2309_v14 = vadd.f32 %v3906_v13, %v2112_v10  ;;  %v2245_v15 = vpop.f32.mrb[29].mxu1 }
 0x65a   : > { %v2308_v16 = vadd.f32 %v2245_v15, %v2111_v12  ;;  %v2340_v21 = vld [vmem:[#allocation2 + $0x8] sm:$0xff] }
 0x65b   : > { %2325 = vst.msk [vmem:[#allocation2 + $0x28] sm:$0xff] %vm1318_vm1, %v2309_v14  ;;  %v2339_v18 = vld [vmem:[#allocation2] sm:$0xff] }
 0x65c   : > { %2324 = vst.msk [vmem:[#allocation2 + $0x20] sm:$0xff] %vm1318_vm1, %v2308_v16  ;;  %v3909_v20 = vpop.f32.mrb[30].mxu1  ;;  %3926 = vmatprep.mubr.msk.f32.mxu0 %vm1318_vm1, %v2339_v18 }
 0x65d   : > { %v2311_v22 = vadd.f32 %v3909_v20, %v2114_v17  ;;  %v2255_v23 = vpop.f32.mrb[31].mxu1  ;;  %3927 = vmatmul.mubr.msk.f32.vlgmr.msra.gmra.mrb[24].mxu0 %vm1318_vm1, %v2340_v21 }
 0x65e   : > { %v2310_v24 = vadd.f32 %v2255_v23, %v2113_v19  ;;  %4089 = vmatpush3.bf16.msra.mxu0 %v4608_v58  ;;  %v2342_v29 = vld [vmem:[#allocation2 + $0x18] sm:$0xff]  ;;  %v2117_v58 = vld [vmem:[#allocation2 + $0x50] sm:$0xff] }
 0x65f   : > { %2327 = vst.msk [vmem:[#allocation2 + $0x38] sm:$0xff] %vm1318_vm1, %v2311_v22  ;;  %v2341_v26 = vld [vmem:[#allocation2 + $0x10] sm:$0xff] }
 0x660   : > { %2326 = vst.msk [vmem:[#allocation2 + $0x30] sm:$0xff] %vm1318_vm1, %v2310_v24  ;;  %v3912_v27 = vpop.f32.mrb[32].mxu1  ;;  %3929 = vmatprep.mubr.msk.f32.mxu0 %vm1318_vm1, %v2341_v26 }
 0x661   : > { %v2313_v11 = vadd.f32 %v3912_v27, %v2116_v25  ;;  %v2265_v30 = vpop.f32.mrb[33].mxu1  ;;  %3930 = vmatmul.mubr.msk.f32.gmra.mrb[26].mxu0 %vm1318_vm1, %v2342_v29 }
 0x662   : > { %v2312_v31 = vadd.f32 %v2265_v30, %v2115_v34  ;;  %v2344_v35 = vld [vmem:[#allocation2 + $0x28] sm:$0xff] }
 0x663   : > { %2329 = vst.msk [vmem:[#allocation2 + $0x48] sm:$0xff] %vm1318_vm1, %v2313_v11  ;;  %v2343_v32 = vld [vmem:[#allocation2 + $0x20] sm:$0xff] }
 0x664   : > { %2328 = vst.msk [vmem:[#allocation2 + $0x40] sm:$0xff] %vm1318_vm1, %v2312_v31  ;;  %v3915_v33 = vpop.f32.mrb[34].mxu1  ;;  %3932 = vmatprep.mubr.msk.f32.mxu0 %vm1318_vm1, %v2343_v32  ;;  %v4122_v31 = vld [vmem:[%s5006_s10] ss:$0 sm:$0xff] }
 0x665   : > { %v2315_v36 = vadd.f32 %v3915_v33, %v2118_v28  ;;  %v2275_v37 = vpop.f32.mrb[35].mxu1  ;;  %3933 = vmatmul.mubr.msk.f32.gmra.mrb[28].mxu0 %vm1318_vm1, %v2344_v35 }
 0x666   : > { %v2314_v38 = vadd.f32 %v2275_v37, %v2117_v58  ;;  %v2346_v43 = vld [vmem:[#allocation2 + $0x38] sm:$0xff] }
 0x667   : > { %2331 = vst.msk [vmem:[#allocation2 + $0x58] sm:$0xff] %vm1318_vm1, %v2315_v36  ;;  %v2345_v39 = vld [vmem:[#allocation2 + $0x30] sm:$0xff] }
 0x668   : > { %2330 = vst.msk [vmem:[#allocation2 + $0x50] sm:$0xff] %vm1318_vm1, %v2314_v38  ;;  %v3918_v41 = vpop.f32.mrb[36].mxu1  ;;  %3935 = vmatprep.mubr.msk.f32.mxu0 %vm1318_vm1, %v2345_v39 }
 0x669   : > { %v2317_v44 = vadd.f32 %v3918_v41, %v2120_v7  ;;  %v2285_v45 = vpop.f32.mrb[37].mxu1  ;;  %3936 = vmatmul.mubr.msk.f32.gmra.mrb[30].mxu0 %vm1318_vm1, %v2346_v43 }
 0x66a   : > { %v2316_v46 = vadd.f32 %v2285_v45, %v2119_v40  ;;  %v2348_v50 = vld [vmem:[#allocation2 + $0x48] sm:$0xff] }
 0x66b   : > { %2333 = vst.msk [vmem:[#allocation2 + $0x68] sm:$0xff] %vm1318_vm1, %v2317_v44  ;;  %v2347_v47 = vld [vmem:[#allocation2 + $0x40] sm:$0xff] }
 0x66c   : > { %2332 = vst.msk [vmem:[#allocation2 + $0x60] sm:$0xff] %vm1318_vm1, %v2316_v46  ;;  %v3921_v49 = vpop.f32.mrb[38].mxu1  ;;  %3938 = vmatprep.mubr.msk.f32.mxu0 %vm1318_vm1, %v2347_v47 }
 0x66d   : > { %v2319_v51 = vadd.f32 %v3921_v49, %v2122_v42  ;;  %v2295_v52 = vpop.f32.mrb[39].mxu1  ;;  %3939 = vmatmul.mubr.msk.f32.gmra.mrb[32].mxu0 %vm1318_vm1, %v2348_v50 }
 0x66e   : > { %v2318_v53 = vadd.f32 %v2295_v52, %v2121_v48  ;;  %v2350_v54 = vld [vmem:[#allocation2 + $0x58] sm:$0xff] }
 0x66f   : > { %2335 = vst.msk [vmem:[#allocation2 + $0x78] sm:$0xff] %vm1318_vm1, %v2319_v51  ;;  %v2349_v55 = vld [vmem:[#allocation2 + $0x50] sm:$0xff] }
 0x670   : > { %2334 = vst.msk [vmem:[#allocation2 + $0x70] sm:$0xff] %vm1318_vm1, %v2318_v53  ;;  %3941 = vmatprep.mubr.msk.f32.mxu0 %vm1318_vm1, %v2349_v55 }
 0x671   : > { %3942 = vmatmul.mubr.msk.f32.gmra.mrb[34].mxu0 %vm1318_vm1, %v2350_v54 }
 0x672   : > { %v2352_v57 = vld [vmem:[#allocation2 + $0x68] sm:$0xff] }
 0x673   : > { %v2351_v56 = vld [vmem:[#allocation2 + $0x60] sm:$0xff] }
 0x674   : > { %3944 = vmatprep.mubr.msk.f32.mxu0 %vm1318_vm1, %v2351_v56 }
 0x675   : > { %3945 = vmatmul.mubr.msk.f32.gmra.mrb[36].mxu0 %vm1318_vm1, %v2352_v57 }
 0x676   : > { %v2354_v61 = vld [vmem:[#allocation2 + $0x78] sm:$0xff] }
 0x677   : > { %v2353_v60 = vld [vmem:[#allocation2 + $0x70] sm:$0xff] }
 0x678   : > { %3947 = vmatprep.mubr.msk.f32.mxu0 %vm1318_vm1, %v2353_v60 }
 0x679   : > { %3948 = vmatmul.mubr.msk.f32.gmra.mrb[38].mxu0 %vm1318_vm1, %v2354_v61 }
 0x730   : > { %v3928_v62 = vpop.f32.mrb[24].mxu0 }
 0x731   : > { %v2492_v63 = vadd.f32 %v3928_v62, %v4616_v59  ;;  %v2486_v0 = vpop.f32.mrb[25].mxu0 }
 0x732   : > { %v2487_v2 = vadd.f32 %v4616_v59, %v2486_v0  ;;  %v3125_v0 = vld [vmem:[%s4256_s29 + $0x10] sm:$0xff] }
 0x733   : > { %v2582_v3 = vmul.f32 0.01, %v2492_v63  ;;  %vm2566_vm12 = vcmp.gt.f32.partialorder %v2492_v63, 0.0 }
 0x734   : > { %vm2565_vm13 = vcmp.gt.f32.partialorder %v2487_v2, 0.0  ;;  %v2581_v4 = vmul.f32 0.01, %v2487_v2  ;;  %v3931_v5 = vpop.f32.mrb[26].mxu0 }
 0x735   : > { %v2502_v6 = vadd.f32 %v3931_v5, %v4616_v59  ;;  %v2496_v8 = vpop.f32.mrb[27].mxu0  ;;  %v2598_v12 = vsel %vm2566_vm12, %v2492_v63, %v2582_v3  ;;  %v4149_v3 = vmov 0   ;;  %v3124_v5 = vld [vmem:[%s4256_s29 + $0x8] sm:$0xff] }
 0x736   : > { %v2497_v9 = vadd.f32 %v4616_v59, %v2496_v8  ;;  %v2597_v10 = vsel %vm2565_vm13, %v2487_v2, %v2581_v4  ;;  %v3123_v2 = vld [vmem:[%s4256_s29] sm:$0xff]  ;;  %4121 = vset.pattern.permute.xlu1 %v4149_v3  ;;  %4120 = vset.pattern.permute.xlu0 %v4149_v3  ;;  %v3126_v4 = vld [vmem:[%s4256_s29 + $0x18] sm:$0xff] }
 0x737   : > { %v2584_v13 = vmul.f32 0.01, %v2502_v6  ;;  %3958 = vmatprep.mubr.msk.f32.mxu1 %vm1618_vm0, %v2597_v10  ;;  %vm2568_vm14 = vcmp.gt.f32.partialorder %v2502_v6, 0.0  ;;  %3151 = vperm.xlu1 %4121, %v3125_v0   ;;  %v3127_v8 = vld [vmem:[%s4256_s29 + $0x20] sm:$0xff]  ;;  %v3129_v10 = vld [vmem:[%s4256_s29 + $0x30] sm:$0xff] }
 0x738   : > { %vm2567_vm15 = vcmp.gt.f32.partialorder %v2497_v9, 0.0  ;;  %v2583_v14 = vmul.f32 0.01, %v2497_v9  ;;  %v3934_v15 = vpop.f32.mrb[28].mxu0  ;;  %3959 = vmatmul.mubr.msk.f32.vlgmr.msra.gmra.mrb[40].mxu1 %vm1618_vm0, %v2598_v12  ;;  %3141 = vperm.xlu0 %4120, %v3123_v2   ;;  %v3132_v12 = vld [vmem:[%s4256_s29 + $0x48] sm:$0xff] }
 0x739   : > { %v2512_v16 = vadd.f32 %v3934_v15, %v4616_v59  ;;  %v2506_v17 = vpop.f32.mrb[29].mxu0  ;;  %v2600_v21 = vsel %vm2568_vm14, %v2502_v6, %v2584_v13  ;;  %v3128_v6 = vld [vmem:[%s4256_s29 + $0x28] sm:$0xff]  ;;  %v3131_v13 = vld [vmem:[%s4256_s29 + $0x40] sm:$0xff]  ;;  %v3133_v15 = vld [vmem:[%s4256_s29 + $0x50] sm:$0xff] }
 0x73a   : > { %v2507_v18 = vadd.f32 %v4616_v59, %v2506_v17  ;;  %v2599_v19 = vsel %vm2567_vm15, %v2497_v9, %v2583_v14  ;;  %v3130_v9 = vld [vmem:[%s4256_s29 + $0x38] sm:$0xff]  ;;  %v3135_v17 = vld [vmem:[%s4256_s29 + $0x60] sm:$0xff] }
 0x73b   : > { %v2586_v20 = vmul.f32 0.01, %v2512_v16  ;;  %3961 = vmatprep.mubr.msk.f32.mxu1 %vm1618_vm0, %v2599_v19  ;;  %vm2570_vm2 = vcmp.gt.f32.partialorder %v2512_v16, 0.0  ;;  %3156 = vperm.xlu1 %4121, %v3126_v4   ;;  %v3134_v14 = vld [vmem:[%s4256_s29 + $0x58] sm:$0xff]  ;;  %v3137_v19 = vld [vmem:[%s4256_s29 + $0x70] sm:$0xff] }
 0x73c   : > { %vm2569_vm3 = vcmp.gt.f32.partialorder %v2507_v18, 0.0  ;;  %v2585_v22 = vmul.f32 0.01, %v2507_v18  ;;  %v3937_v23 = vpop.f32.mrb[30].mxu0  ;;  %3962 = vmatmul.mubr.msk.f32.gmra.mrb[42].mxu1 %vm1618_vm0, %v2600_v21  ;;  %3146 = vperm.xlu0 %4120, %v3124_v5  }
 0x73d   : > { %v2522_v24 = vadd.f32 %v3937_v23, %v4616_v59  ;;  %v2516_v25 = vpop.f32.mrb[31].mxu0  ;;  %v2602_v29 = vsel %vm2570_vm2, %v2512_v16, %v2586_v20  ;;  %v3136_v16 = vld [vmem:[%s4256_s29 + $0x68] sm:$0xff] }
 0x73e   : > { %v2517_v26 = vadd.f32 %v4616_v59, %v2516_v25  ;;  %v2601_v34 = vsel %vm2569_vm3, %v2507_v18, %v2585_v22  ;;  %v3138_v18 = vld [vmem:[%s4256_s29 + $0x78] sm:$0xff] }
 0x73f   : > { %v2588_v27 = vmul.f32 0.01, %v2522_v24  ;;  %3964 = vmatprep.mubr.msk.f32.mxu1 %vm1618_vm0, %v2601_v34  ;;  %vm2572_vm4 = vcmp.gt.f32.partialorder %v2522_v24, 0.0  ;;  %3166 = vperm.xlu1 %4121, %v3128_v6   ;;  %v4822_v34 = vld [vmem:[%s5008_s12] ss:$0 sm:$0xff] }
 0x740   : > { %vm2571_vm5 = vcmp.gt.f32.partialorder %v2517_v26, 0.0  ;;  %v2587_v11 = vmul.f32 0.01, %v2517_v26  ;;  %v3940_v30 = vpop.f32.mrb[32].mxu0  ;;  %3965 = vmatmul.mubr.msk.f32.gmra.mrb[44].mxu1 %vm1618_vm0, %v2602_v29  ;;  %3161 = vperm.xlu0 %4120, %v3127_v8  }
 0x741   : > { %v2532_v28 = vadd.f32 %v4122_v31, %v3940_v30  ;;  %v2526_v32 = vpop.f32.mrb[33].mxu0  ;;  %v2604_v35 = vsel %vm2572_vm4, %v2522_v24, %v2588_v27 }
 0x742   : > { %v2527_v58 = vadd.f32 %v4122_v31, %v2526_v32  ;;  %v2603_v33 = vsel %vm2571_vm5, %v2517_v26, %v2587_v11 }
 0x743   : > { %v2590_v59 = vmul.f32 0.01, %v2532_v28  ;;  %3967 = vmatprep.mubr.msk.f32.mxu1 %vm1618_vm0, %v2603_v33  ;;  %vm2574_vm6 = vcmp.gt.f32.partialorder %v2532_v28, 0.0  ;;  %3176 = vperm.xlu1 %4121, %v3130_v9  }
 0x744   : > { %vm2573_vm7 = vcmp.gt.f32.partialorder %v2527_v58, 0.0  ;;  %v2589_v36 = vmul.f32 0.01, %v2527_v58  ;;  %v3943_v37 = vpop.f32.mrb[34].mxu0  ;;  %3968 = vmatmul.mubr.msk.f32.gmra.mrb[46].mxu1 %vm1618_vm0, %v2604_v35  ;;  %3171 = vperm.xlu0 %4120, %v3129_v10  }
 0x745   : > { %v2542_v38 = vadd.f32 %v4122_v31, %v3943_v37  ;;  %v2536_v7 = vpop.f32.mrb[35].mxu0  ;;  %v2606_v43 = vsel %vm2574_vm6, %v2532_v28, %v2590_v59 }
 0x746   : > { %v2537_v39 = vadd.f32 %v4122_v31, %v2536_v7  ;;  %v2605_v40 = vsel %vm2573_vm7, %v2527_v58, %v2589_v36 }
 0x747   : > { %v2592_v41 = vmul.f32 0.01, %v2542_v38  ;;  %3970 = vmatprep.mubr.msk.f32.mxu1 %vm1618_vm0, %v2605_v40  ;;  %vm2576_vm8 = vcmp.gt.f32.partialorder %v2542_v38, 0.0  ;;  %3186 = vperm.xlu1 %4121, %v3132_v12  }
 0x748   : > { %vm2575_vm9 = vcmp.gt.f32.partialorder %v2537_v39, 0.0  ;;  %v2591_v44 = vmul.f32 0.01, %v2537_v39  ;;  %v3946_v45 = vpop.f32.mrb[36].mxu0  ;;  %3971 = vmatmul.mubr.msk.f32.gmra.mrb[48].mxu1 %vm1618_vm0, %v2606_v43  ;;  %3181 = vperm.xlu0 %4120, %v3131_v13  }
 0x749   : > { %v2552_v46 = vadd.f32 %v4122_v31, %v3946_v45  ;;  %v2546_v42 = vpop.f32.mrb[37].mxu0  ;;  %v2608_v50 = vsel %vm2576_vm8, %v2542_v38, %v2592_v41 }
 0x74a   : > { %v2547_v47 = vadd.f32 %v4122_v31, %v2546_v42  ;;  %v2607_v48 = vsel %vm2575_vm9, %v2537_v39, %v2591_v44 }
 0x74b   : > { %v2594_v49 = vmul.f32 0.01, %v2552_v46  ;;  %3973 = vmatprep.mubr.msk.f32.mxu1 %vm1618_vm0, %v2607_v48  ;;  %vm2578_vm10 = vcmp.gt.f32.partialorder %v2552_v46, 0.0  ;;  %3196 = vperm.xlu1 %4121, %v3134_v14  }
 0x74c   : > { %vm2577_vm11 = vcmp.gt.f32.partialorder %v2547_v47, 0.0  ;;  %v2593_v51 = vmul.f32 0.01, %v2547_v47  ;;  %v3949_v52 = vpop.f32.mrb[38].mxu0  ;;  %3974 = vmatmul.mubr.msk.f32.gmra.mrb[50].mxu1 %vm1618_vm0, %v2608_v50  ;;  %3191 = vperm.xlu0 %4120, %v3133_v15  }
 0x74d   : > { %v2562_v53 = vadd.f32 %v4122_v31, %v3949_v52  ;;  %v2556_v55 = vpop.f32.mrb[39].mxu0  ;;  %v2610_v60 = vsel %vm2578_vm10, %v2552_v46, %v2594_v49 }
 0x74e   : > { %v2557_v54 = vadd.f32 %v4122_v31, %v2556_v55  ;;  %v2609_v56 = vsel %vm2577_vm11, %v2547_v47, %v2593_v51 }
 0x74f   : > { %v2596_v57 = vmul.f32 0.01, %v2562_v53  ;;  %3976 = vmatprep.mubr.msk.f32.mxu1 %vm1618_vm0, %v2609_v56  ;;  %vm2580_vm12 = vcmp.gt.f32.partialorder %v2562_v53, 0.0  ;;  %3206 = vperm.xlu1 %4121, %v3136_v16  }
 0x750   : > { %vm2579_vm13 = vcmp.gt.f32.partialorder %v2557_v54, 0.0  ;;  %v2595_v61 = vmul.f32 0.01, %v2557_v54  ;;  %3977 = vmatmul.mubr.msk.f32.gmra.mrb[52].mxu1 %vm1618_vm0, %v2610_v60  ;;  %3201 = vperm.xlu0 %4120, %v3135_v17  }
 0x751   : > { %v2612_v63 = vsel %vm2580_vm12, %v2562_v53, %v2596_v57 }
 0x752   : > { %v2611_v62 = vsel %vm2579_vm13, %v2557_v54, %v2595_v61 }
 0x753   : > { %3979 = vmatprep.mubr.msk.f32.mxu1 %vm1618_vm0, %v2611_v62  ;;  %3216 = vperm.xlu1 %4121, %v3138_v18  }
 0x754   : > { %3980 = vmatmul.mubr.msk.f32.gmra.mrb[54].mxu1 %vm1618_vm0, %v2612_v63  ;;  %3211 = vperm.xlu0 %4120, %v3137_v19  }
 0x80b   : > { %v3960_v20 = vpop.f32.mrb[40].mxu1 }
 0x80c   : > { %v2739_v21 = vadd.f32 %v3960_v20, %v4654_v1  ;;  %v2733_v22 = vpop.f32.mrb[41].mxu1 }
 0x80d   : > { %v2734_v23 = vadd.f32 %v4654_v1, %v2733_v22  ;;  %v3142_v22 = vpop.permute.xlu0 %3141 }
 0x80e   : > { %v2829_v24 = vmul.f32 0.01, %v2739_v21  ;;  %vm2813_vm0 = vcmp.gt.f32.partialorder %v2739_v21, 0.0 }
 0x80f   : > { %vm2812_vm14 = vcmp.gt.f32.partialorder %v2734_v23, 0.0  ;;  %v2828_v25 = vmul.f32 0.01, %v2734_v23  ;;  %v3963_v26 = vpop.f32.mrb[42].mxu1 }
 0x810   : > { %v2749_v27 = vadd.f32 %v4822_v34, %v3963_v26  ;;  %v2743_v29 = vpop.f32.mrb[43].mxu1  ;;  %v2845_v31 = vsel %vm2813_vm0, %v2739_v21, %v2829_v24  ;;  %v3152_v21 = vpop.permute.xlu1 %3151 }
 0x811   : > { %v2744_v11 = vadd.f32 %v4822_v34, %v2743_v29  ;;  %v2844_v30 = vsel %vm2812_vm14, %v2734_v23, %v2828_v25  ;;  %v3147_v24 = vpop.permute.xlu0 %3146  ;;  %v4857_v25 = vld [vmem:[%s5010_s14] ss:$0 sm:$0xff] }
 0x812   : > { %v2831_v28 = vmul.f32 0.01, %v2749_v27  ;;  %3986 = vmatprep.mubr.msk.f32.mxu0 %vm1318_vm1, %v2844_v30  ;;  %vm2815_vm15 = vcmp.gt.f32.partialorder %v2749_v27, 0.0 }
 0x813   : > { %vm2814_vm2 = vcmp.gt.f32.partialorder %v2744_v11, 0.0  ;;  %v2830_v1 = vmul.f32 0.01, %v2744_v11  ;;  %v3966_v32 = vpop.f32.mrb[44].mxu1  ;;  %3987 = vmatmul.mubr.msk.f32.vlgmr.msra.gmra.mrb[40].mxu0 %vm1318_vm1, %v2845_v31 }
 0x814   : > { %v2759_v58 = vadd.f32 %v4822_v34, %v3966_v32  ;;  %v2753_v33 = vpop.f32.mrb[45].mxu1  ;;  %v2847_v37 = vsel %vm2815_vm15, %v2749_v27, %v2831_v28  ;;  %v3157_v23 = vpop.permute.xlu1 %3156 }
 0x815   : > { %v2754_v59 = vadd.f32 %v4822_v34, %v2753_v33  ;;  %v2846_v35 = vsel %vm2814_vm2, %v2744_v11, %v2830_v1  ;;  %v3162_v31 = vpop.permute.xlu0 %3161 }
 0x816   : > { %v2833_v36 = vmul.f32 0.01, %v2759_v58  ;;  %3989 = vmatprep.mubr.msk.f32.mxu0 %vm1318_vm1, %v2846_v35  ;;  %vm2817_vm3 = vcmp.gt.f32.partialorder %v2759_v58, 0.0 }
 0x817   : > { %vm2816_vm4 = vcmp.gt.f32.partialorder %v2754_v59, 0.0  ;;  %v2832_v38 = vmul.f32 0.01, %v2754_v59  ;;  %v3969_v7 = vpop.f32.mrb[46].mxu1  ;;  %3990 = vmatmul.mubr.msk.f32.gmra.mrb[42].mxu0 %vm1318_vm1, %v2847_v37  ;;  %v3107_v37 = vld [vmem:[%s5011_s15] sm:$0xff] }
 0x818   : > { %v2769_v39 = vadd.f32 %v4822_v34, %v3969_v7  ;;  %v2763_v40 = vpop.f32.mrb[47].mxu1  ;;  %v2849_v45 = vsel %vm2817_vm3, %v2759_v58, %v2833_v36  ;;  %v3167_v11 = vpop.permute.xlu1 %3166  ;;  %v3108_v58 = vld [vmem:[%s5011_s15 + $0x8] sm:$0xff] }
 0x819   : > { %v2764_v41 = vadd.f32 %v4822_v34, %v2763_v40  ;;  %v2848_v43 = vsel %vm2816_vm4, %v2754_v59, %v2832_v38 }
 0x81a   : > { %v2835_v44 = vmul.f32 0.01, %v2769_v39  ;;  %3992 = vmatprep.mubr.msk.f32.mxu0 %vm1318_vm1, %v2848_v43  ;;  %vm2819_vm5 = vcmp.gt.f32.partialorder %v2769_v39, 0.0 }
 0x81b   : > { %vm2818_vm6 = vcmp.gt.f32.partialorder %v2764_v41, 0.0  ;;  %v2834_v46 = vmul.f32 0.01, %v2764_v41  ;;  %v3972_v42 = vpop.f32.mrb[48].mxu1  ;;  %3993 = vmatmul.mubr.msk.f32.gmra.mrb[44].mxu0 %vm1318_vm1, %v2849_v45 }
 0x81c   : > { %v2779_v47 = vadd.f32 %v4822_v34, %v3972_v42  ;;  %v2773_v48 = vpop.f32.mrb[49].mxu1  ;;  %v2851_v52 = vsel %vm2819_vm5, %v2769_v39, %v2835_v44  ;;  %v3177_v44 = vpop.permute.xlu1 %3176  ;;  %v3110_v42 = vld [vmem:[%s5011_s15 + $0x18] sm:$0xff] }
 0x81d   : > { %v2774_v49 = vadd.f32 %v4822_v34, %v2773_v48  ;;  %v2850_v50 = vsel %vm2818_vm6, %v2764_v41, %v2834_v46 }
 0x81e   : > { %v2837_v51 = vmul.f32 0.01, %v2779_v47  ;;  %3995 = vmatprep.mubr.msk.f32.mxu0 %vm1318_vm1, %v2850_v50  ;;  %vm2821_vm7 = vcmp.gt.f32.partialorder %v2779_v47, 0.0 }
 0x81f   : > { %vm2820_vm8 = vcmp.gt.f32.partialorder %v2774_v49, 0.0  ;;  %v2836_v53 = vmul.f32 0.01, %v2774_v49  ;;  %v3975_v55 = vpop.f32.mrb[50].mxu1  ;;  %3996 = vmatmul.mubr.msk.f32.gmra.mrb[46].mxu0 %vm1318_vm1, %v2851_v52  ;;  %v3109_v52 = vld [vmem:[%s5011_s15 + $0x10] sm:$0xff] }
 0x820   : > { %v2789_v54 = vadd.f32 %v4822_v34, %v3975_v55  ;;  %v2783_v56 = vpop.f32.mrb[51].mxu1  ;;  %v2853_v62 = vsel %vm2821_vm7, %v2779_v47, %v2837_v51 }
 0x821   : > { %v2784_v57 = vadd.f32 %v4822_v34, %v2783_v56  ;;  %v2852_v60 = vsel %vm2820_vm8, %v2774_v49, %v2836_v53  ;;  %v3172_v49 = vpop.permute.xlu0 %3171 }
 0x822   : > { %v2839_v61 = vmul.f32 0.01, %v2789_v54  ;;  %3998 = vmatprep.mubr.msk.f32.mxu0 %vm1318_vm1, %v2852_v60  ;;  %vm2823_vm9 = vcmp.gt.f32.partialorder %v2789_v54, 0.0 }
 0x823   : > { %vm2822_vm10 = vcmp.gt.f32.partialorder %v2784_v57, 0.0  ;;  %v2838_v63 = vmul.f32 0.01, %v2784_v57  ;;  %v3978_v0 = vpop.f32.mrb[52].mxu1  ;;  %3999 = vmatmul.mubr.msk.f32.gmra.mrb[48].mxu0 %vm1318_vm1, %v2853_v62 }
 0x824   : > { %v2799_v2 = vadd.f32 %v4822_v34, %v3978_v0  ;;  %v2793_v3 = vpop.f32.mrb[53].mxu1  ;;  %v2855_v8 = vsel %vm2823_vm9, %v2789_v54, %v2839_v61 }
 0x825   : > { %v2794_v4 = vadd.f32 %v4822_v34, %v2793_v3  ;;  %v2854_v5 = vsel %vm2822_vm10, %v2784_v57, %v2838_v63  ;;  %v3112_v63 = vld [vmem:[%s5011_s15 + $0x28] sm:$0xff] }
 0x826   : > { %v2841_v6 = vmul.f32 0.01, %v2799_v2  ;;  %4001 = vmatprep.mubr.msk.f32.mxu0 %vm1318_vm1, %v2854_v5  ;;  %vm2825_vm11 = vcmp.gt.f32.partialorder %v2799_v2, 0.0  ;;  %v3111_v5 = vld [vmem:[%s5011_s15 + $0x20] sm:$0xff] }
 0x827   : > { %vm2824_vm12 = vcmp.gt.f32.partialorder %v2794_v4, 0.0  ;;  %v2840_v9 = vmul.f32 0.01, %v2794_v4  ;;  %v3981_v10 = vpop.f32.mrb[54].mxu1  ;;  %4002 = vmatmul.mubr.msk.f32.gmra.mrb[50].mxu0 %vm1318_vm1, %v2855_v8  ;;  %v3187_v8 = vpop.permute.xlu1 %3186 }
 0x828   : > { %v2809_v12 = vadd.f32 %v4822_v34, %v3981_v10  ;;  %v2803_v13 = vpop.f32.mrb[55].mxu1  ;;  %v2857_v17 = vsel %vm2825_vm11, %v2799_v2, %v2841_v6 }
 0x829   : > { %v2804_v14 = vadd.f32 %v4822_v34, %v2803_v13  ;;  %v2856_v15 = vsel %vm2824_vm12, %v2794_v4, %v2840_v9 }
 0x82a   : > { %v2843_v16 = vmul.f32 0.01, %v2809_v12  ;;  %4004 = vmatprep.mubr.msk.f32.mxu0 %vm1318_vm1, %v2856_v15  ;;  %vm2827_vm13 = vcmp.gt.f32.partialorder %v2809_v12, 0.0 }
 0x82b   : > { %vm2826_vm0 = vcmp.gt.f32.partialorder %v2804_v14, 0.0  ;;  %v2842_v18 = vmul.f32 0.01, %v2804_v14  ;;  %4005 = vmatmul.mubr.msk.f32.gmra.mrb[52].mxu0 %vm1318_vm1, %v2857_v17 }
 0x82c   : > { %v2859_v20 = vsel %vm2827_vm13, %v2809_v12, %v2843_v16  ;;  %v3182_v12 = vpop.permute.xlu0 %3181 }
 0x82d   : > { %v2858_v19 = vsel %vm2826_vm0, %v2804_v14, %v2842_v18  ;;  %v3114_v18 = vld [vmem:[%s5011_s15 + $0x38] sm:$0xff] }
 0x82e   : > { %4007 = vmatprep.mubr.msk.f32.mxu0 %vm1318_vm1, %v2858_v19 }
 0x82f   : > { %4008 = vmatmul.mubr.msk.f32.gmra.mrb[54].mxu0 %vm1318_vm1, %v2859_v20 }
 0x8e6   : > { %v3988_v26 = vpop.f32.mrb[40].mxu0 }
 0x8e7   : > { %v2986_v34 = vadd.f32 %v3988_v26, %v4857_v25  ;;  %v2980_v27 = vpop.f32.mrb[41].mxu0 }
 0x8e8   : > { %v2981_v29 = vadd.f32 %v4857_v25, %v2980_v27 }
 0x8e9   : > { %vm3060_vm14 = vcmp.gt.f32.partialorder %v2986_v34, 0.0  ;;  %v3076_v30 = vmul.f32 0.01, %v2986_v34 }
 0x8ea   : > { %vm3059_vm15 = vcmp.gt.f32.partialorder %v2981_v29, 0.0  ;;  %v3075_v28 = vmul.f32 0.01, %v2981_v29  ;;  %v3991_v1 = vpop.f32.mrb[42].mxu0 }
 0x8eb   : > { %v3092_v32 = vsel %vm3060_vm14, %v2986_v34, %v3076_v30  ;;  %v2996_v33 = vadd.f32 %v3991_v1, %v4857_v25  ;;  %v2990_v59 = vpop.f32.mrb[43].mxu0  ;;  %v3197_v30 = vpop.permute.xlu1 %3196  ;;  %v3116_v1 = vld [vmem:[%s5011_s15 + $0x48] sm:$0xff] }
 0x8ec   : > { %v3220_v35 = vmul.f32 %v3147_v24, %v3092_v32  ;;  %v3091_v36 = vsel %vm3059_vm15, %v2981_v29, %v3075_v28  ;;  %v2991_v38 = vadd.f32 %v4857_v25, %v2990_v59 }
 0x8ed   : > { %v3219_v7 = vmul.f32 %v3142_v22, %v3091_v36  ;;  %vm3062_vm2 = vcmp.gt.f32.partialorder %v2996_v33, 0.0  ;;  %v3078_v39 = vmul.f32 0.01, %v2996_v33  ;;  %v3115_v36 = vld [vmem:[%s5011_s15 + $0x40] sm:$0xff] }
 0x8ee   : > { %v3236_v40 = vadd.f32 %v3220_v35, %v3108_v58  ;;  %vm3061_vm3 = vcmp.gt.f32.partialorder %v2991_v38, 0.0  ;;  %v3077_v41 = vmul.f32 0.01, %v2991_v38  ;;  %v3994_v43 = vpop.f32.mrb[44].mxu0 }
 0x8ef   : > { %v3235_v45 = vadd.f32 %v3219_v7, %v3107_v37  ;;  %v3094_v46 = vsel %vm3062_vm2, %v2996_v33, %v3078_v39  ;;  %v3006_v47 = vadd.f32 %v3994_v43, %v4857_v25  ;;  %v3000_v48 = vpop.f32.mrb[45].mxu0  ;;  %v3192_v33 = vpop.permute.xlu0 %3191 }
 0x8f0   : > { %3252 = vst.msk [vmem:[%s5011_s15 + $0x8] sm:$0xff] %vm1318_vm1, %v3236_v40  ;;  %v3222_v50 = vmul.f32 %v3157_v23, %v3094_v46  ;;  %v3093_v51 = vsel %vm3061_vm3, %v2991_v38, %v3077_v41  ;;  %v3001_v53 = vadd.f32 %v4857_v25, %v3000_v48  ;;  %v3113_v23 = vld [vmem:[%s5011_s15 + $0x30] sm:$0xff] }
 0x8f1   : > { %3251 = vst.msk [vmem:[%s5011_s15] sm:$0xff] %vm1318_vm1, %v3235_v45  ;;  %v3221_v55 = vmul.f32 %v3152_v21, %v3093_v51  ;;  %vm3064_vm4 = vcmp.gt.f32.partialorder %v3006_v47, 0.0  ;;  %v3080_v54 = vmul.f32 0.01, %v3006_v47  ;;  %v3118_v45 = vld [vmem:[%s5011_s15 + $0x58] sm:$0xff]  ;;  %v3207_v51 = vpop.permute.xlu1 %3206 }
 0x8f2   : > { %v3238_v56 = vadd.f32 %v3222_v50, %v3110_v42  ;;  %vm3063_vm5 = vcmp.gt.f32.partialorder %v3001_v53, 0.0  ;;  %v3079_v57 = vmul.f32 0.01, %v3001_v53  ;;  %v3997_v60 = vpop.f32.mrb[46].mxu0 }
 0x8f3   : > { %v3237_v61 = vadd.f32 %v3221_v55, %v3109_v52  ;;  %v3096_v62 = vsel %vm3064_vm4, %v3006_v47, %v3080_v54  ;;  %v3016_v0 = vadd.f32 %v3997_v60, %v4857_v25  ;;  %v3010_v2 = vpop.f32.mrb[47].mxu0  ;;  %v3202_v55 = vpop.permute.xlu0 %3201 }
 0x8f4   : > { %3254 = vst.msk [vmem:[%s5011_s15 + $0x18] sm:$0xff] %vm1318_vm1, %v3238_v56  ;;  %v3224_v3 = vmul.f32 %v3167_v11, %v3096_v62  ;;  %v3095_v4 = vsel %vm3063_vm5, %v3001_v53, %v3079_v57  ;;  %v3011_v6 = vadd.f32 %v4857_v25, %v3010_v2  ;;  %v3120_v62 = vld [vmem:[%s5011_s15 + $0x68] sm:$0xff] }
 0x8f5   : > { %3253 = vst.msk [vmem:[%s5011_s15 + $0x10] sm:$0xff] %vm1318_vm1, %v3237_v61  ;;  %v3223_v9 = vmul.f32 %v3162_v31, %v3095_v4  ;;  %vm3066_vm6 = vcmp.gt.f32.partialorder %v3016_v0, 0.0  ;;  %v3082_v10 = vmul.f32 0.01, %v3016_v0  ;;  %v3119_v4 = vld [vmem:[%s5011_s15 + $0x60] sm:$0xff] }
 0x8f6   : > { %v3240_v13 = vadd.f32 %v3224_v3, %v3112_v63  ;;  %vm3065_vm7 = vcmp.gt.f32.partialorder %v3011_v6, 0.0  ;;  %v3081_v14 = vmul.f32 0.01, %v3011_v6  ;;  %v4000_v15 = vpop.f32.mrb[48].mxu0 }
 0x8f7   : > { %v3239_v16 = vadd.f32 %v3223_v9, %v3111_v5  ;;  %v3098_v17 = vsel %vm3066_vm6, %v3016_v0, %v3082_v10  ;;  %v3026_v19 = vadd.f32 %v4000_v15, %v4857_v25  ;;  %v3020_v20 = vpop.f32.mrb[49].mxu0  ;;  %v3122_v15 = vld [vmem:[%s5011_s15 + $0x78] sm:$0xff] }
 0x8f8   : > { %3256 = vst.msk [vmem:[%s5011_s15 + $0x28] sm:$0xff] %vm1318_vm1, %v3240_v13  ;;  %v3226_v21 = vmul.f32 %v3177_v44, %v3098_v17  ;;  %v3097_v22 = vsel %vm3065_vm7, %v3011_v6, %v3081_v14  ;;  %v3021_v24 = vadd.f32 %v4857_v25, %v3020_v20 }
 0x8f9   : > { %3255 = vst.msk [vmem:[%s5011_s15 + $0x20] sm:$0xff] %vm1318_vm1, %v3239_v16  ;;  %v3225_v26 = vmul.f32 %v3172_v49, %v3097_v22  ;;  %vm3068_vm8 = vcmp.gt.f32.partialorder %v3026_v19, 0.0  ;;  %v3084_v34 = vmul.f32 0.01, %v3026_v19  ;;  %v3117_v49 = vld [vmem:[%s5011_s15 + $0x50] sm:$0xff]  ;;  %v3212_v16 = vpop.permute.xlu0 %3211 }
 0x8fa   : > { %v3242_v27 = vadd.f32 %v3226_v21, %v3114_v18  ;;  %vm3067_vm9 = vcmp.gt.f32.partialorder %v3021_v24, 0.0  ;;  %v3083_v29 = vmul.f32 0.01, %v3021_v24  ;;  %v4003_v11 = vpop.f32.mrb[50].mxu0  ;;  %v3121_v18 = vld [vmem:[%s5011_s15 + $0x70] sm:$0xff] }
 0x8fb   : > { %v3241_v31 = vadd.f32 %v3225_v26, %v3113_v23  ;;  %v3100_v28 = vsel %vm3068_vm8, %v3026_v19, %v3084_v34  ;;  %v3036_v32 = vadd.f32 %v4003_v11, %v4857_v25  ;;  %v3030_v58 = vpop.f32.mrb[51].mxu0 }
 0x8fc   : > { %3258 = vst.msk [vmem:[%s5011_s15 + $0x38] sm:$0xff] %vm1318_vm1, %v3242_v27  ;;  %v3228_v59 = vmul.f32 %v3187_v8, %v3100_v28  ;;  %v3099_v35 = vsel %vm3067_vm9, %v3021_v24, %v3083_v29  ;;  %v3031_v37 = vadd.f32 %v4857_v25, %v3030_v58 }
 0x8fd   : > { %3257 = vst.msk [vmem:[%s5011_s15 + $0x30] sm:$0xff] %vm1318_vm1, %v3241_v31  ;;  %v3227_v38 = vmul.f32 %v3182_v12, %v3099_v35  ;;  %vm3070_vm10 = vcmp.gt.f32.partialorder %v3036_v32, 0.0  ;;  %v3086_v7 = vmul.f32 0.01, %v3036_v32  ;;  %v3217_v12 = vpop.permute.xlu1 %3216 }
 0x8fe   : > { %v3244_v39 = vadd.f32 %v3228_v59, %v3116_v1  ;;  %vm3069_vm11 = vcmp.gt.f32.partialorder %v3031_v37, 0.0  ;;  %v3085_v40 = vmul.f32 0.01, %v3031_v37  ;;  %v4006_v41 = vpop.f32.mrb[52].mxu0 }
 0x8ff   : > { %v3243_v43 = vadd.f32 %v3227_v38, %v3115_v36  ;;  %v3102_v44 = vsel %vm3070_vm10, %v3036_v32, %v3086_v7  ;;  %v3046_v46 = vadd.f32 %v4006_v41, %v4857_v25  ;;  %v3040_v42 = vpop.f32.mrb[53].mxu0 }
 0x900   : > { %3260 = vst.msk [vmem:[%s5011_s15 + $0x48] sm:$0xff] %vm1318_vm1, %v3244_v39  ;;  %v3230_v47 = vmul.f32 %v3197_v30, %v3102_v44  ;;  %v3101_v48 = vsel %vm3069_vm11, %v3031_v37, %v3085_v40  ;;  %v3041_v50 = vadd.f32 %v4857_v25, %v3040_v42 }
 0x901   : > { %3259 = vst.msk [vmem:[%s5011_s15 + $0x40] sm:$0xff] %vm1318_vm1, %v3243_v43  ;;  %v3229_v52 = vmul.f32 %v3192_v33, %v3101_v48  ;;  %vm3072_vm12 = vcmp.gt.f32.partialorder %v3046_v46, 0.0  ;;  %v3088_v53 = vmul.f32 0.01, %v3046_v46 }
 0x902   : > { %v3246_v54 = vadd.f32 %v3230_v47, %v3118_v45  ;;  %vm3071_vm13 = vcmp.gt.f32.partialorder %v3041_v50, 0.0  ;;  %v3087_v56 = vmul.f32 0.01, %v3041_v50  ;;  %v4009_v57 = vpop.f32.mrb[54].mxu0 }
 0x903   : > { %v3245_v60 = vadd.f32 %v3229_v52, %v3117_v49  ;;  %v3104_v61 = vsel %vm3072_vm12, %v3046_v46, %v3088_v53  ;;  %v3056_v63 = vadd.f32 %v4009_v57, %v4857_v25  ;;  %v3050_v0 = vpop.f32.mrb[55].mxu0 }
 0x904   : > { %3262 = vst.msk [vmem:[%s5011_s15 + $0x58] sm:$0xff] %vm1318_vm1, %v3246_v54  ;;  %v3232_v2 = vmul.f32 %v3207_v51, %v3104_v61  ;;  %v3103_v3 = vsel %vm3071_vm13, %v3041_v50, %v3087_v56  ;;  %v3051_v5 = vadd.f32 %v4857_v25, %v3050_v0 }
 0x905   : > { %3261 = vst.msk [vmem:[%s5011_s15 + $0x50] sm:$0xff] %vm1318_vm1, %v3245_v60  ;;  %v3231_v6 = vmul.f32 %v3202_v55, %v3103_v3  ;;  %vm3074_vm0 = vcmp.gt.f32.partialorder %v3056_v63, 0.0  ;;  %v3090_v8 = vmul.f32 0.01, %v3056_v63 }
 0x906   : > { %v3248_v9 = vadd.f32 %v3232_v2, %v3120_v62  ;;  %vm3073_vm14 = vcmp.gt.f32.partialorder %v3051_v5, 0.0  ;;  %v3089_v10 = vmul.f32 0.01, %v3051_v5 }
 0x907   : > { %v3247_v13 = vadd.f32 %v3231_v6, %v3119_v4  ;;  %v3106_v14 = vsel %vm3074_vm0, %v3056_v63, %v3090_v8 }
 0x908   : > { %3264 = vst.msk [vmem:[%s5011_s15 + $0x68] sm:$0xff] %vm1318_vm1, %v3248_v9  ;;  %v3234_v25 = vmul.f32 %v3217_v12, %v3106_v14  ;;  %v3105_v17 = vsel %vm3073_vm14, %v3051_v5, %v3089_v10 }
 0x909   : > { %3263 = vst.msk [vmem:[%s5011_s15 + $0x60] sm:$0xff] %vm1318_vm1, %v3247_v13  ;;  %v3233_v19 = vmul.f32 %v3212_v16, %v3105_v17 }
 0x90a   : > { %v3250_v20 = vadd.f32 %v3234_v25, %v3122_v15 }
 0x90b   : > { %v3249_v21 = vadd.f32 %v3233_v19, %v3121_v18 }
 0x90c   : > { %3266 = vst.msk [vmem:[%s5011_s15 + $0x78] sm:$0xff] %vm1318_vm1, %v3250_v20 }
 0x90d   : > { %3265 = vst.msk [vmem:[%s5011_s15 + $0x70] sm:$0xff] %vm1318_vm1, %v3249_v21 }
 0x90e PF: > { %s25_s20 = sadd.s32 1, %s4146_s20   ;;  %s5015_s18 = sld [smem:[#allocation3_spill]] }
 0x90f   : > { %p22_p6 = scmp.ge.s32.totalorder %s25_s20, 4   ;;  %s5016_s19 = sld [smem:[#allocation4_spill]] }
 0x911   :  { %24 = sbr.rel (!%p22_p6) target bundleno = 2 (0x2), region = 122 }

</bundles_post_ra>
